<compile_context>
chip_gen: v7x
topology: tpu7x:2x2x1
jax: 0.10.0
libtpu: 0.0.40
codegen_flags: <defaults>
</compile_context>

<pallas_src>
import functools

import jax
import jax.numpy as jnp
from jax import lax
from jax.experimental import pallas as pl
from jax.experimental.pallas import tpu as pltpu


def conv_block_kernel(x_ref, w_ref, shift_ref, alpha_ref, mask_ref, o_ref, *scratch,
                      TH, W, Cin, Cout, KH, KW, use_mxu):
    """One (batch element, row strip) per grid step.

    x_ref:     (Cin, (TH+KH-1)*W)  bf16 halo strip, lane-dense (H padded, W unpadded)
    w_ref:     (Cout, K)           K = KH*KW*Cin, BN scale folded (bf16 MXU / f32 VPU path)
    shift_ref: (Cout, 1)           folded BN shift = beta - mean*scale      (f32)
    alpha_ref: (Cout, 1)           PReLU per-channel slope                  (f32)
    mask_ref:  (KW, TH*W)          0/1 W-edge validity mask per kw offset
    o_ref:     (Cout, TH*W)        lane-dense NCHW output strip
    scratch:   [(K, TH*W) bf16]    im2col scratch (MXU path only)
    """
    THW = TH * W
    pw = KW // 2
    mk = mask_ref[...]

    def tap(xs, kh, kw):
        # Row shift: static lane slice of the halo strip (lane-dense, no reshape).
        v = xs[:, kh * W: kh * W + THW]
        dw = kw - pw
        if dw != 0:
            # Column shift: XLU lane rotation + zero the wrapped / out-of-image columns.
            v = pltpu.roll(v, (-dw) % THW, 1) * mk[kw:kw + 1, :]
        return v

    if use_mxu:
        # Large-channel path: lane-dense im2col into VMEM, one fused MXU matmul.
        col_ref = scratch[0]
        xs = x_ref[...]                                      # bf16
        for kh in range(KH):
            for kw in range(KW):
                base = (kh * KW + kw) * Cin
                # Cin % 16 == 0 here -> bf16 pack-aligned, full-tile (unmasked) stores.
                col_ref[base:base + Cin, :] = tap(xs, kh, kw)
        acc = jnp.dot(w_ref[...], col_ref[...], preferred_element_type=jnp.float32)
    else:
        # Tiny-channel path: KH*KW*Cin VPU rank-1 updates; no im2col scratch, MXU idle.
        xs = x_ref[...].astype(jnp.float32)                  # single upcast per strip
        wm = w_ref[...]                                      # (Cout, K) f32
        acc = jnp.zeros((Cout, THW), jnp.float32)
        for kh in range(KH):
            for kw in range(KW):
                v = tap(xs, kh, kw)
                base = (kh * KW + kw) * Cin
                for ci in range(Cin):
                    acc = acc + wm[:, base + ci:base + ci + 1] * v[ci:ci + 1, :]

    # Folded BatchNorm shift (scale already inside the weights) + PReLU.
    y = acc + shift_ref[...]
    y = jnp.where(y >= 0.0, y, alpha_ref[...] * y)
    o_ref[...] = y.astype(o_ref.dtype)


def _pick_row_tile(H, W):
    """Row-strip height: whole image when small, else >=1024 output lanes per step."""
    if H * W <= 2048:
        return H
    for th in range(1, H + 1):
        if H % th == 0 and th * W >= 1024 and (th * W) % 128 == 0:
            return th
    return H


def conv_block_forward(x_nchw, w_oihw, gamma, beta, running_mean, running_var,
                       prelu_alpha, eps=1e-5, row_tile=None):
    """ConvBlock forward (odd kernel, stride 1, 'same' padding). Input/Output are NCHW."""
    N, Cin, H, W = x_nchw.shape
    Cout, Cin_w, KH, KW = w_oihw.shape
    assert Cin_w == Cin
    ph, pw = KH // 2, KW // 2          # stride-1 'same' padding assumed (module test config)
    K = Cin * KH * KW
    halo = KH - 1

    TH = _pick_row_tile(H, W) if row_tile is None else row_tile
    assert H % TH == 0, "row_tile must divide H"
    S = H // TH
    THW = TH * W

    # MXU im2col path only when the per-tap col writes are bf16-pack aligned; otherwise
    # the tiny-channel VPU path (the MXU is <2% utilized at Cin=4/Cout=8 anyway).
    use_mxu = (Cin % 16 == 0) and (Cin >= 16)
    compute_dtype = jnp.bfloat16 if use_mxu else jnp.float32

    # Fold BatchNorm (inference running stats) into the weights / a per-channel shift.
    scale = gamma / jnp.sqrt(running_var + eps)                          # (Cout,)
    shift = (beta - running_mean * scale).reshape(Cout, 1).astype(jnp.float32)
    alpha = prelu_alpha.reshape(Cout, 1).astype(jnp.float32)

    # Weight matrix (Cout, K), K ordered (kh, kw, ci), BN scale folded.
    w_mat = (w_oihw * scale[:, None, None, None]).transpose(0, 2, 3, 1).reshape(Cout, K)
    w_mat = w_mat.astype(jnp.bfloat16 if use_mxu else jnp.float32)

    # bf16 input, H padded by ph (W left unpadded so the lane axis stays dense), cut into
    # per-strip halo slabs of TH + 2*ph rows and flattened -> lane-dense DMA per grid step.
    x_bf16 = x_nchw.astype(jnp.bfloat16)
    x_padh = jnp.pad(x_bf16, ((0, 0), (0, 0), (ph, ph), (0, 0)))
    x_halo = jnp.stack([x_padh[:, :, s * TH: s * TH + TH + halo, :] for s in range(S)],
                       axis=1)                                           # (N,S,Cin,TH+halo,W)
    x_halo = x_halo.reshape(N, S, Cin, (TH + halo) * W)

    # 0/1 W-edge validity mask per kw offset (periodic with period W along the lane axis).
    w_idx = jnp.arange(W, dtype=jnp.int32)
    mask = jnp.stack([((w_idx + (kw - pw)) >= 0) & ((w_idx + (kw - pw)) <= W - 1)
                      for kw in range(KW)], axis=0)                      # (KW, W)
    mask = jnp.tile(mask, (1, TH)).astype(compute_dtype)                 # (KW, TH*W)

    kernel = functools.partial(conv_block_kernel, TH=TH, W=W, Cin=Cin, Cout=Cout,
                               KH=KH, KW=KW, use_mxu=use_mxu)

    out_flat = pl.pallas_call(
        kernel,
        out_shape=jax.ShapeDtypeStruct((N, Cout, H * W), x_nchw.dtype),
        grid_spec=pltpu.PrefetchScalarGridSpec(
            num_scalar_prefetch=0,
            grid=(N, S),
            in_specs=[
                # Halo strip for this (n, s): only O(Cin*(TH+2)*W) VMEM, double-buffered.
                pl.BlockSpec((None, None, Cin, (TH + halo) * W),
                             lambda n, s: (n, s, 0, 0)),
                pl.BlockSpec((Cout, K), lambda n, s: (0, 0)),
                pl.BlockSpec((Cout, 1), lambda n, s: (0, 0)),
                pl.BlockSpec((Cout, 1), lambda n, s: (0, 0)),
                pl.BlockSpec((KW, THW), lambda n, s: (0, 0)),
            ],
            # Lane-dense NCHW output strip.
            out_specs=pl.BlockSpec((None, Cout, THW), lambda n, s: (n, 0, s)),
            scratch_shapes=([pltpu.VMEM((K, THW), jnp.bfloat16)] if use_mxu else []),
        ),
        compiler_params=pltpu.CompilerParams(
            dimension_semantics=("parallel", "parallel")),
    )(x_halo, w_mat, shift, alpha, mask)

    # Free reshape: flattened spatial axis back to (H, W); already NCHW order.
    return out_flat.reshape(N, Cout, H, W)


def reference_forward(x_nchw, w_oihw, gamma, beta, running_mean, running_var,
                      prelu_alpha, eps=1e-5):
    """Pure-JAX f32 reference (same semantics) for the correctness check."""
    x_nhwc = jnp.transpose(x_nchw, (0, 2, 3, 1))
    w_hwio = jnp.transpose(w_oihw, (2, 3, 1, 0))
    y = lax.conv_general_dilated(
        x_nhwc, w_hwio, window_strides=(1, 1), padding="SAME",
        dimension_numbers=("NHWC", "HWIO", "NHWC"),
        precision=lax.Precision.HIGHEST)
    scale = gamma / jnp.sqrt(running_var + eps)
    shift = beta - running_mean * scale
    y = y * scale + shift
    y = jnp.where(y >= 0, y, prelu_alpha * y)
    return jnp.transpose(y, (0, 3, 1, 2))


def _make_inputs(key, N, Cin, Cout, H, W, KH=3, KW=3):
    k1, k2, k3, k4, k5, k6 = jax.random.split(key, 6)
    x = jax.random.normal(k1, (N, Cin, H, W), dtype=jnp.float32)
    w = jax.random.normal(k2, (Cout, Cin, KH, KW), dtype=jnp.float32) * 0.1
    gamma = 1.0 + 0.1 * jax.random.normal(k3, (Cout,), dtype=jnp.float32)
    beta = 0.1 * jax.random.normal(k4, (Cout,), dtype=jnp.float32)
    rmean = 0.1 * jax.random.normal(k5, (Cout,), dtype=jnp.float32)
    rvar = jnp.abs(jax.random.normal(k6, (Cout,), dtype=jnp.float32)) + 0.5
    alpha = jnp.full((Cout,), 0.25, dtype=jnp.float32)   # PyTorch PReLU default
    return x, w, gamma, beta, rmean, rvar, alpha


if __name__ == "__main__":
    key = jax.random.PRNGKey(0)
    key1, key2 = jax.random.split(key, 2)

    # Config 1: ConvBlock(4, 8, kernel_size=3, stride=1, padding=1) — tiny-channel VPU path.
    args1 = _make_inputs(key1, N=2, Cin=4, Cout=8, H=16, W=16)
    out1 = jax.block_until_ready(conv_block_forward(*args1))
    ref1 = reference_forward(*args1)
    assert out1.shape == (2, 8, 16, 16)
    assert jnp.allclose(out1, ref1, atol=5e-2, rtol=5e-2), "mismatch vs reference (VPU path)"

    # Config 2: larger channel count (Cin % 16 == 0) — exercises the fused MXU im2col path.
    args2 = _make_inputs(key2, N=1, Cin=32, Cout=32, H=16, W=16)
    out2 = jax.block_until_ready(conv_block_forward(*args2))
    ref2 = reference_forward(*args2)
    assert out2.shape == (1, 32, 16, 16)
    assert jnp.allclose(out2, ref2, atol=5e-2, rtol=5e-2), "mismatch vs reference (MXU path)"

    print("KERNEL_OK")
</pallas_src>

<mosaic_0001>
module attributes {stable_mosaic.version = 11 : i64} {
  func.func @conv_block_kernel(%arg0: i32, %arg1: i32, %arg2: memref<1x1x4x288xbf16, #tpu.memory_space<vmem>>, %arg3: memref<8x36xf32, #tpu.memory_space<vmem>>, %arg4: memref<8x1xf32, #tpu.memory_space<vmem>>, %arg5: memref<8x1xf32, #tpu.memory_space<vmem>>, %arg6: memref<3x256xf32, #tpu.memory_space<vmem>>, %arg7: memref<1x8x256xf32, #tpu.memory_space<vmem>>) attributes {dimension_semantics = [#tpu.dimension_semantics<parallel>, #tpu.dimension_semantics<parallel>], iteration_bounds = array<i64: 2, 1>, scalar_prefetch = 0 : i64, scratch_operands = 0 : i64, tpu.core_type = #tpu.core_type<tc>, window_params = [{transform_indices = @transform_0, window_bounds = array<i64: 1, 1, 4, 288>}, {pipeline_mode = #tpu.pipeline_mode<synchronous>, transform_indices = @transform_1, window_bounds = array<i64: 8, 36>}, {pipeline_mode = #tpu.pipeline_mode<synchronous>, transform_indices = @transform_2, window_bounds = array<i64: 8, 1>}, {pipeline_mode = #tpu.pipeline_mode<synchronous>, transform_indices = @transform_3, window_bounds = array<i64: 8, 1>}, {pipeline_mode = #tpu.pipeline_mode<synchronous>, transform_indices = @transform_4, window_bounds = array<i64: 3, 256>}, {transform_indices = @transform_5, window_bounds = array<i64: 1, 8, 256>}]} {
    %c0 = arith.constant 0 : index
    %c0_0 = arith.constant 0 : index
    %0 = vector.load %arg6[%c0, %c0_0] : memref<3x256xf32, #tpu.memory_space<vmem>>, vector<3x256xf32>
    %c0_1 = arith.constant 0 : index
    %c0_2 = arith.constant 0 : index
    %c0_3 = arith.constant 0 : index
    %c0_4 = arith.constant 0 : index
    %1 = vector.load %arg2[%c0_1, %c0_2, %c0_3, %c0_4] : memref<1x1x4x288xbf16, #tpu.memory_space<vmem>>, vector<1x1x4x288xbf16>
    %2 = vector.shape_cast %1 : vector<1x1x4x288xbf16> to vector<4x288xbf16>
    %3 = arith.extf %2 : vector<4x288xbf16> to vector<4x288xf32>
    %c0_5 = arith.constant 0 : index
    %c0_6 = arith.constant 0 : index
    %4 = vector.load %arg3[%c0_5, %c0_6] : memref<8x36xf32, #tpu.memory_space<vmem>>, vector<8x36xf32>
    %cst = arith.constant 0.000000e+00 : f32
    %5 = vector.broadcast %cst : f32 to vector<8x256xf32>
    %6 = vector.extract_strided_slice %3 {offsets = [0, 0], sizes = [4, 256], strides = [1, 1]} : vector<4x288xf32> to vector<4x256xf32>
    %c1_i32 = arith.constant 1 : i32
    %7 = tpu.dynamic_rotate %6 by %c1_i32 dim 1 : vector<4x256xf32>, i32 -> vector<4x256xf32>
    %8 = vector.extract_strided_slice %0 {offsets = [0, 0], sizes = [1, 256], strides = [1, 1]} : vector<3x256xf32> to vector<1x256xf32>
    %9 = vector.broadcast %8 : vector<1x256xf32> to vector<4x256xf32>
    %10 = arith.mulf %7, %9 : vector<4x256xf32>
    %11 = vector.extract_strided_slice %4 {offsets = [0, 0], sizes = [8, 1], strides = [1, 1]} : vector<8x36xf32> to vector<8x1xf32>
    %12 = vector.extract_strided_slice %10 {offsets = [0, 0], sizes = [1, 256], strides = [1, 1]} : vector<4x256xf32> to vector<1x256xf32>
    %13 = vector.broadcast %11 : vector<8x1xf32> to vector<8x256xf32>
    %14 = vector.broadcast %12 : vector<1x256xf32> to vector<8x256xf32>
    %15 = arith.mulf %13, %14 : vector<8x256xf32>
    %16 = arith.addf %5, %15 : vector<8x256xf32>
    %17 = vector.extract_strided_slice %4 {offsets = [0, 1], sizes = [8, 1], strides = [1, 1]} : vector<8x36xf32> to vector<8x1xf32>
    %18 = vector.extract_strided_slice %10 {offsets = [1, 0], sizes = [1, 256], strides = [1, 1]} : vector<4x256xf32> to vector<1x256xf32>
    %19 = vector.broadcast %17 : vector<8x1xf32> to vector<8x256xf32>
    %20 = vector.broadcast %18 : vector<1x256xf32> to vector<8x256xf32>
    %21 = arith.mulf %19, %20 : vector<8x256xf32>
    %22 = arith.addf %16, %21 : vector<8x256xf32>
    %23 = vector.extract_strided_slice %4 {offsets = [0, 2], sizes = [8, 1], strides = [1, 1]} : vector<8x36xf32> to vector<8x1xf32>
    %24 = vector.extract_strided_slice %10 {offsets = [2, 0], sizes = [1, 256], strides = [1, 1]} : vector<4x256xf32> to vector<1x256xf32>
    %25 = vector.broadcast %23 : vector<8x1xf32> to vector<8x256xf32>
    %26 = vector.broadcast %24 : vector<1x256xf32> to vector<8x256xf32>
    %27 = arith.mulf %25, %26 : vector<8x256xf32>
    %28 = arith.addf %22, %27 : vector<8x256xf32>
    %29 = vector.extract_strided_slice %4 {offsets = [0, 3], sizes = [8, 1], strides = [1, 1]} : vector<8x36xf32> to vector<8x1xf32>
    %30 = vector.extract_strided_slice %10 {offsets = [3, 0], sizes = [1, 256], strides = [1, 1]} : vector<4x256xf32> to vector<1x256xf32>
    %31 = vector.broadcast %29 : vector<8x1xf32> to vector<8x256xf32>
    %32 = vector.broadcast %30 : vector<1x256xf32> to vector<8x256xf32>
    %33 = arith.mulf %31, %32 : vector<8x256xf32>
    %34 = arith.addf %28, %33 : vector<8x256xf32>
    %35 = vector.extract_strided_slice %3 {offsets = [0, 0], sizes = [4, 256], strides = [1, 1]} : vector<4x288xf32> to vector<4x256xf32>
    %36 = vector.extract_strided_slice %4 {offsets = [0, 4], sizes = [8, 1], strides = [1, 1]} : vector<8x36xf32> to vector<8x1xf32>
    %37 = vector.extract_strided_slice %35 {offsets = [0, 0], sizes = [1, 256], strides = [1, 1]} : vector<4x256xf32> to vector<1x256xf32>
    %38 = vector.broadcast %36 : vector<8x1xf32> to vector<8x256xf32>
    %39 = vector.broadcast %37 : vector<1x256xf32> to vector<8x256xf32>
    %40 = arith.mulf %38, %39 : vector<8x256xf32>
    %41 = arith.addf %34, %40 : vector<8x256xf32>
    %42 = vector.extract_strided_slice %4 {offsets = [0, 5], sizes = [8, 1], strides = [1, 1]} : vector<8x36xf32> to vector<8x1xf32>
    %43 = vector.extract_strided_slice %35 {offsets = [1, 0], sizes = [1, 256], strides = [1, 1]} : vector<4x256xf32> to vector<1x256xf32>
    %44 = vector.broadcast %42 : vector<8x1xf32> to vector<8x256xf32>
    %45 = vector.broadcast %43 : vector<1x256xf32> to vector<8x256xf32>
    %46 = arith.mulf %44, %45 : vector<8x256xf32>
    %47 = arith.addf %41, %46 : vector<8x256xf32>
    %48 = vector.extract_strided_slice %4 {offsets = [0, 6], sizes = [8, 1], strides = [1, 1]} : vector<8x36xf32> to vector<8x1xf32>
    %49 = vector.extract_strided_slice %35 {offsets = [2, 0], sizes = [1, 256], strides = [1, 1]} : vector<4x256xf32> to vector<1x256xf32>
    %50 = vector.broadcast %48 : vector<8x1xf32> to vector<8x256xf32>
    %51 = vector.broadcast %49 : vector<1x256xf32> to vector<8x256xf32>
    %52 = arith.mulf %50, %51 : vector<8x256xf32>
    %53 = arith.addf %47, %52 : vector<8x256xf32>
    %54 = vector.extract_strided_slice %4 {offsets = [0, 7], sizes = [8, 1], strides = [1, 1]} : vector<8x36xf32> to vector<8x1xf32>
    %55 = vector.extract_strided_slice %35 {offsets = [3, 0], sizes = [1, 256], strides = [1, 1]} : vector<4x256xf32> to vector<1x256xf32>
    %56 = vector.broadcast %54 : vector<8x1xf32> to vector<8x256xf32>
    %57 = vector.broadcast %55 : vector<1x256xf32> to vector<8x256xf32>
    %58 = arith.mulf %56, %57 : vector<8x256xf32>
    %59 = arith.addf %53, %58 : vector<8x256xf32>
    %60 = vector.extract_strided_slice %3 {offsets = [0, 0], sizes = [4, 256], strides = [1, 1]} : vector<4x288xf32> to vector<4x256xf32>
    %c255_i32 = arith.constant 255 : i32
    %61 = tpu.dynamic_rotate %60 by %c255_i32 dim 1 : vector<4x256xf32>, i32 -> vector<4x256xf32>
    %62 = vector.extract_strided_slice %0 {offsets = [2, 0], sizes = [1, 256], strides = [1, 1]} : vector<3x256xf32> to vector<1x256xf32>
    %63 = vector.broadcast %62 : vector<1x256xf32> to vector<4x256xf32>
    %64 = arith.mulf %61, %63 : vector<4x256xf32>
    %65 = vector.extract_strided_slice %4 {offsets = [0, 8], sizes = [8, 1], strides = [1, 1]} : vector<8x36xf32> to vector<8x1xf32>
    %66 = vector.extract_strided_slice %64 {offsets = [0, 0], sizes = [1, 256], strides = [1, 1]} : vector<4x256xf32> to vector<1x256xf32>
    %67 = vector.broadcast %65 : vector<8x1xf32> to vector<8x256xf32>
    %68 = vector.broadcast %66 : vector<1x256xf32> to vector<8x256xf32>
    %69 = arith.mulf %67, %68 : vector<8x256xf32>
    %70 = arith.addf %59, %69 : vector<8x256xf32>
    %71 = vector.extract_strided_slice %4 {offsets = [0, 9], sizes = [8, 1], strides = [1, 1]} : vector<8x36xf32> to vector<8x1xf32>
    %72 = vector.extract_strided_slice %64 {offsets = [1, 0], sizes = [1, 256], strides = [1, 1]} : vector<4x256xf32> to vector<1x256xf32>
    %73 = vector.broadcast %71 : vector<8x1xf32> to vector<8x256xf32>
    %74 = vector.broadcast %72 : vector<1x256xf32> to vector<8x256xf32>
    %75 = arith.mulf %73, %74 : vector<8x256xf32>
    %76 = arith.addf %70, %75 : vector<8x256xf32>
    %77 = vector.extract_strided_slice %4 {offsets = [0, 10], sizes = [8, 1], strides = [1, 1]} : vector<8x36xf32> to vector<8x1xf32>
    %78 = vector.extract_strided_slice %64 {offsets = [2, 0], sizes = [1, 256], strides = [1, 1]} : vector<4x256xf32> to vector<1x256xf32>
    %79 = vector.broadcast %77 : vector<8x1xf32> to vector<8x256xf32>
    %80 = vector.broadcast %78 : vector<1x256xf32> to vector<8x256xf32>
    %81 = arith.mulf %79, %80 : vector<8x256xf32>
    %82 = arith.addf %76, %81 : vector<8x256xf32>
    %83 = vector.extract_strided_slice %4 {offsets = [0, 11], sizes = [8, 1], strides = [1, 1]} : vector<8x36xf32> to vector<8x1xf32>
    %84 = vector.extract_strided_slice %64 {offsets = [3, 0], sizes = [1, 256], strides = [1, 1]} : vector<4x256xf32> to vector<1x256xf32>
    %85 = vector.broadcast %83 : vector<8x1xf32> to vector<8x256xf32>
    %86 = vector.broadcast %84 : vector<1x256xf32> to vector<8x256xf32>
    %87 = arith.mulf %85, %86 : vector<8x256xf32>
    %88 = arith.addf %82, %87 : vector<8x256xf32>
    %89 = vector.extract_strided_slice %3 {offsets = [0, 16], sizes = [4, 256], strides = [1, 1]} : vector<4x288xf32> to vector<4x256xf32>
    %c1_i32_7 = arith.constant 1 : i32
    %90 = tpu.dynamic_rotate %89 by %c1_i32_7 dim 1 : vector<4x256xf32>, i32 -> vector<4x256xf32>
    %91 = vector.extract_strided_slice %0 {offsets = [0, 0], sizes = [1, 256], strides = [1, 1]} : vector<3x256xf32> to vector<1x256xf32>
    %92 = vector.broadcast %91 : vector<1x256xf32> to vector<4x256xf32>
    %93 = arith.mulf %90, %92 : vector<4x256xf32>
    %94 = vector.extract_strided_slice %4 {offsets = [0, 12], sizes = [8, 1], strides = [1, 1]} : vector<8x36xf32> to vector<8x1xf32>
    %95 = vector.extract_strided_slice %93 {offsets = [0, 0], sizes = [1, 256], strides = [1, 1]} : vector<4x256xf32> to vector<1x256xf32>
    %96 = vector.broadcast %94 : vector<8x1xf32> to vector<8x256xf32>
    %97 = vector.broadcast %95 : vector<1x256xf32> to vector<8x256xf32>
    %98 = arith.mulf %96, %97 : vector<8x256xf32>
    %99 = arith.addf %88, %98 : vector<8x256xf32>
    %100 = vector.extract_strided_slice %4 {offsets = [0, 13], sizes = [8, 1], strides = [1, 1]} : vector<8x36xf32> to vector<8x1xf32>
    %101 = vector.extract_strided_slice %93 {offsets = [1, 0], sizes = [1, 256], strides = [1, 1]} : vector<4x256xf32> to vector<1x256xf32>
    %102 = vector.broadcast %100 : vector<8x1xf32> to vector<8x256xf32>
    %103 = vector.broadcast %101 : vector<1x256xf32> to vector<8x256xf32>
    %104 = arith.mulf %102, %103 : vector<8x256xf32>
    %105 = arith.addf %99, %104 : vector<8x256xf32>
    %106 = vector.extract_strided_slice %4 {offsets = [0, 14], sizes = [8, 1], strides = [1, 1]} : vector<8x36xf32> to vector<8x1xf32>
    %107 = vector.extract_strided_slice %93 {offsets = [2, 0], sizes = [1, 256], strides = [1, 1]} : vector<4x256xf32> to vector<1x256xf32>
    %108 = vector.broadcast %106 : vector<8x1xf32> to vector<8x256xf32>
    %109 = vector.broadcast %107 : vector<1x256xf32> to vector<8x256xf32>
    %110 = arith.mulf %108, %109 : vector<8x256xf32>
    %111 = arith.addf %105, %110 : vector<8x256xf32>
    %112 = vector.extract_strided_slice %4 {offsets = [0, 15], sizes = [8, 1], strides = [1, 1]} : vector<8x36xf32> to vector<8x1xf32>
    %113 = vector.extract_strided_slice %93 {offsets = [3, 0], sizes = [1, 256], strides = [1, 1]} : vector<4x256xf32> to vector<1x256xf32>
    %114 = vector.broadcast %112 : vector<8x1xf32> to vector<8x256xf32>
    %115 = vector.broadcast %113 : vector<1x256xf32> to vector<8x256xf32>
    %116 = arith.mulf %114, %115 : vector<8x256xf32>
    %117 = arith.addf %111, %116 : vector<8x256xf32>
    %118 = vector.extract_strided_slice %3 {offsets = [0, 16], sizes = [4, 256], strides = [1, 1]} : vector<4x288xf32> to vector<4x256xf32>
    %119 = vector.extract_strided_slice %4 {offsets = [0, 16], sizes = [8, 1], strides = [1, 1]} : vector<8x36xf32> to vector<8x1xf32>
    %120 = vector.extract_strided_slice %118 {offsets = [0, 0], sizes = [1, 256], strides = [1, 1]} : vector<4x256xf32> to vector<1x256xf32>
    %121 = vector.broadcast %119 : vector<8x1xf32> to vector<8x256xf32>
    %122 = vector.broadcast %120 : vector<1x256xf32> to vector<8x256xf32>
    %123 = arith.mulf %121, %122 : vector<8x256xf32>
    %124 = arith.addf %117, %123 : vector<8x256xf32>
    %125 = vector.extract_strided_slice %4 {offsets = [0, 17], sizes = [8, 1], strides = [1, 1]} : vector<8x36xf32> to vector<8x1xf32>
    %126 = vector.extract_strided_slice %118 {offsets = [1, 0], sizes = [1, 256], strides = [1, 1]} : vector<4x256xf32> to vector<1x256xf32>
    %127 = vector.broadcast %125 : vector<8x1xf32> to vector<8x256xf32>
    %128 = vector.broadcast %126 : vector<1x256xf32> to vector<8x256xf32>
    %129 = arith.mulf %127, %128 : vector<8x256xf32>
    %130 = arith.addf %124, %129 : vector<8x256xf32>
    %131 = vector.extract_strided_slice %4 {offsets = [0, 18], sizes = [8, 1], strides = [1, 1]} : vector<8x36xf32> to vector<8x1xf32>
    %132 = vector.extract_strided_slice %118 {offsets = [2, 0], sizes = [1, 256], strides = [1, 1]} : vector<4x256xf32> to vector<1x256xf32>
    %133 = vector.broadcast %131 : vector<8x1xf32> to vector<8x256xf32>
    %134 = vector.broadcast %132 : vector<1x256xf32> to vector<8x256xf32>
    %135 = arith.mulf %133, %134 : vector<8x256xf32>
    %136 = arith.addf %130, %135 : vector<8x256xf32>
    %137 = vector.extract_strided_slice %4 {offsets = [0, 19], sizes = [8, 1], strides = [1, 1]} : vector<8x36xf32> to vector<8x1xf32>
    %138 = vector.extract_strided_slice %118 {offsets = [3, 0], sizes = [1, 256], strides = [1, 1]} : vector<4x256xf32> to vector<1x256xf32>
    %139 = vector.broadcast %137 : vector<8x1xf32> to vector<8x256xf32>
    %140 = vector.broadcast %138 : vector<1x256xf32> to vector<8x256xf32>
    %141 = arith.mulf %139, %140 : vector<8x256xf32>
    %142 = arith.addf %136, %141 : vector<8x256xf32>
    %143 = vector.extract_strided_slice %3 {offsets = [0, 16], sizes = [4, 256], strides = [1, 1]} : vector<4x288xf32> to vector<4x256xf32>
    %c255_i32_8 = arith.constant 255 : i32
    %144 = tpu.dynamic_rotate %143 by %c255_i32_8 dim 1 : vector<4x256xf32>, i32 -> vector<4x256xf32>
    %145 = vector.extract_strided_slice %0 {offsets = [2, 0], sizes = [1, 256], strides = [1, 1]} : vector<3x256xf32> to vector<1x256xf32>
    %146 = vector.broadcast %145 : vector<1x256xf32> to vector<4x256xf32>
    %147 = arith.mulf %144, %146 : vector<4x256xf32>
    %148 = vector.extract_strided_slice %4 {offsets = [0, 20], sizes = [8, 1], strides = [1, 1]} : vector<8x36xf32> to vector<8x1xf32>
    %149 = vector.extract_strided_slice %147 {offsets = [0, 0], sizes = [1, 256], strides = [1, 1]} : vector<4x256xf32> to vector<1x256xf32>
    %150 = vector.broadcast %148 : vector<8x1xf32> to vector<8x256xf32>
    %151 = vector.broadcast %149 : vector<1x256xf32> to vector<8x256xf32>
    %152 = arith.mulf %150, %151 : vector<8x256xf32>
    %153 = arith.addf %142, %152 : vector<8x256xf32>
    %154 = vector.extract_strided_slice %4 {offsets = [0, 21], sizes = [8, 1], strides = [1, 1]} : vector<8x36xf32> to vector<8x1xf32>
    %155 = vector.extract_strided_slice %147 {offsets = [1, 0], sizes = [1, 256], strides = [1, 1]} : vector<4x256xf32> to vector<1x256xf32>
    %156 = vector.broadcast %154 : vector<8x1xf32> to vector<8x256xf32>
    %157 = vector.broadcast %155 : vector<1x256xf32> to vector<8x256xf32>
    %158 = arith.mulf %156, %157 : vector<8x256xf32>
    %159 = arith.addf %153, %158 : vector<8x256xf32>
    %160 = vector.extract_strided_slice %4 {offsets = [0, 22], sizes = [8, 1], strides = [1, 1]} : vector<8x36xf32> to vector<8x1xf32>
    %161 = vector.extract_strided_slice %147 {offsets = [2, 0], sizes = [1, 256], strides = [1, 1]} : vector<4x256xf32> to vector<1x256xf32>
    %162 = vector.broadcast %160 : vector<8x1xf32> to vector<8x256xf32>
    %163 = vector.broadcast %161 : vector<1x256xf32> to vector<8x256xf32>
    %164 = arith.mulf %162, %163 : vector<8x256xf32>
    %165 = arith.addf %159, %164 : vector<8x256xf32>
    %166 = vector.extract_strided_slice %4 {offsets = [0, 23], sizes = [8, 1], strides = [1, 1]} : vector<8x36xf32> to vector<8x1xf32>
    %167 = vector.extract_strided_slice %147 {offsets = [3, 0], sizes = [1, 256], strides = [1, 1]} : vector<4x256xf32> to vector<1x256xf32>
    %168 = vector.broadcast %166 : vector<8x1xf32> to vector<8x256xf32>
    %169 = vector.broadcast %167 : vector<1x256xf32> to vector<8x256xf32>
    %170 = arith.mulf %168, %169 : vector<8x256xf32>
    %171 = arith.addf %165, %170 : vector<8x256xf32>
    %172 = vector.extract_strided_slice %3 {offsets = [0, 32], sizes = [4, 256], strides = [1, 1]} : vector<4x288xf32> to vector<4x256xf32>
    %c1_i32_9 = arith.constant 1 : i32
    %173 = tpu.dynamic_rotate %172 by %c1_i32_9 dim 1 : vector<4x256xf32>, i32 -> vector<4x256xf32>
    %174 = vector.extract_strided_slice %0 {offsets = [0, 0], sizes = [1, 256], strides = [1, 1]} : vector<3x256xf32> to vector<1x256xf32>
    %175 = vector.broadcast %174 : vector<1x256xf32> to vector<4x256xf32>
    %176 = arith.mulf %173, %175 : vector<4x256xf32>
    %177 = vector.extract_strided_slice %4 {offsets = [0, 24], sizes = [8, 1], strides = [1, 1]} : vector<8x36xf32> to vector<8x1xf32>
    %178 = vector.extract_strided_slice %176 {offsets = [0, 0], sizes = [1, 256], strides = [1, 1]} : vector<4x256xf32> to vector<1x256xf32>
    %179 = vector.broadcast %177 : vector<8x1xf32> to vector<8x256xf32>
    %180 = vector.broadcast %178 : vector<1x256xf32> to vector<8x256xf32>
    %181 = arith.mulf %179, %180 : vector<8x256xf32>
    %182 = arith.addf %171, %181 : vector<8x256xf32>
    %183 = vector.extract_strided_slice %4 {offsets = [0, 25], sizes = [8, 1], strides = [1, 1]} : vector<8x36xf32> to vector<8x1xf32>
    %184 = vector.extract_strided_slice %176 {offsets = [1, 0], sizes = [1, 256], strides = [1, 1]} : vector<4x256xf32> to vector<1x256xf32>
    %185 = vector.broadcast %183 : vector<8x1xf32> to vector<8x256xf32>
    %186 = vector.broadcast %184 : vector<1x256xf32> to vector<8x256xf32>
    %187 = arith.mulf %185, %186 : vector<8x256xf32>
    %188 = arith.addf %182, %187 : vector<8x256xf32>
    %189 = vector.extract_strided_slice %4 {offsets = [0, 26], sizes = [8, 1], strides = [1, 1]} : vector<8x36xf32> to vector<8x1xf32>
    %190 = vector.extract_strided_slice %176 {offsets = [2, 0], sizes = [1, 256], strides = [1, 1]} : vector<4x256xf32> to vector<1x256xf32>
    %191 = vector.broadcast %189 : vector<8x1xf32> to vector<8x256xf32>
    %192 = vector.broadcast %190 : vector<1x256xf32> to vector<8x256xf32>
    %193 = arith.mulf %191, %192 : vector<8x256xf32>
    %194 = arith.addf %188, %193 : vector<8x256xf32>
    %195 = vector.extract_strided_slice %4 {offsets = [0, 27], sizes = [8, 1], strides = [1, 1]} : vector<8x36xf32> to vector<8x1xf32>
    %196 = vector.extract_strided_slice %176 {offsets = [3, 0], sizes = [1, 256], strides = [1, 1]} : vector<4x256xf32> to vector<1x256xf32>
    %197 = vector.broadcast %195 : vector<8x1xf32> to vector<8x256xf32>
    %198 = vector.broadcast %196 : vector<1x256xf32> to vector<8x256xf32>
    %199 = arith.mulf %197, %198 : vector<8x256xf32>
    %200 = arith.addf %194, %199 : vector<8x256xf32>
    %201 = vector.extract_strided_slice %3 {offsets = [0, 32], sizes = [4, 256], strides = [1, 1]} : vector<4x288xf32> to vector<4x256xf32>
    %202 = vector.extract_strided_slice %4 {offsets = [0, 28], sizes = [8, 1], strides = [1, 1]} : vector<8x36xf32> to vector<8x1xf32>
    %203 = vector.extract_strided_slice %201 {offsets = [0, 0], sizes = [1, 256], strides = [1, 1]} : vector<4x256xf32> to vector<1x256xf32>
    %204 = vector.broadcast %202 : vector<8x1xf32> to vector<8x256xf32>
    %205 = vector.broadcast %203 : vector<1x256xf32> to vector<8x256xf32>
    %206 = arith.mulf %204, %205 : vector<8x256xf32>
    %207 = arith.addf %200, %206 : vector<8x256xf32>
    %208 = vector.extract_strided_slice %4 {offsets = [0, 29], sizes = [8, 1], strides = [1, 1]} : vector<8x36xf32> to vector<8x1xf32>
    %209 = vector.extract_strided_slice %201 {offsets = [1, 0], sizes = [1, 256], strides = [1, 1]} : vector<4x256xf32> to vector<1x256xf32>
    %210 = vector.broadcast %208 : vector<8x1xf32> to vector<8x256xf32>
    %211 = vector.broadcast %209 : vector<1x256xf32> to vector<8x256xf32>
    %212 = arith.mulf %210, %211 : vector<8x256xf32>
    %213 = arith.addf %207, %212 : vector<8x256xf32>
    %214 = vector.extract_strided_slice %4 {offsets = [0, 30], sizes = [8, 1], strides = [1, 1]} : vector<8x36xf32> to vector<8x1xf32>
    %215 = vector.extract_strided_slice %201 {offsets = [2, 0], sizes = [1, 256], strides = [1, 1]} : vector<4x256xf32> to vector<1x256xf32>
    %216 = vector.broadcast %214 : vector<8x1xf32> to vector<8x256xf32>
    %217 = vector.broadcast %215 : vector<1x256xf32> to vector<8x256xf32>
    %218 = arith.mulf %216, %217 : vector<8x256xf32>
    %219 = arith.addf %213, %218 : vector<8x256xf32>
    %220 = vector.extract_strided_slice %4 {offsets = [0, 31], sizes = [8, 1], strides = [1, 1]} : vector<8x36xf32> to vector<8x1xf32>
    %221 = vector.extract_strided_slice %201 {offsets = [3, 0], sizes = [1, 256], strides = [1, 1]} : vector<4x256xf32> to vector<1x256xf32>
    %222 = vector.broadcast %220 : vector<8x1xf32> to vector<8x256xf32>
    %223 = vector.broadcast %221 : vector<1x256xf32> to vector<8x256xf32>
    %224 = arith.mulf %222, %223 : vector<8x256xf32>
    %225 = arith.addf %219, %224 : vector<8x256xf32>
    %226 = vector.extract_strided_slice %3 {offsets = [0, 32], sizes = [4, 256], strides = [1, 1]} : vector<4x288xf32> to vector<4x256xf32>
    %c255_i32_10 = arith.constant 255 : i32
    %227 = tpu.dynamic_rotate %226 by %c255_i32_10 dim 1 : vector<4x256xf32>, i32 -> vector<4x256xf32>
    %228 = vector.extract_strided_slice %0 {offsets = [2, 0], sizes = [1, 256], strides = [1, 1]} : vector<3x256xf32> to vector<1x256xf32>
    %229 = vector.broadcast %228 : vector<1x256xf32> to vector<4x256xf32>
    %230 = arith.mulf %227, %229 : vector<4x256xf32>
    %231 = vector.extract_strided_slice %4 {offsets = [0, 32], sizes = [8, 1], strides = [1, 1]} : vector<8x36xf32> to vector<8x1xf32>
    %232 = vector.extract_strided_slice %230 {offsets = [0, 0], sizes = [1, 256], strides = [1, 1]} : vector<4x256xf32> to vector<1x256xf32>
    %233 = vector.broadcast %231 : vector<8x1xf32> to vector<8x256xf32>
    %234 = vector.broadcast %232 : vector<1x256xf32> to vector<8x256xf32>
    %235 = arith.mulf %233, %234 : vector<8x256xf32>
    %236 = arith.addf %225, %235 : vector<8x256xf32>
    %237 = vector.extract_strided_slice %4 {offsets = [0, 33], sizes = [8, 1], strides = [1, 1]} : vector<8x36xf32> to vector<8x1xf32>
    %238 = vector.extract_strided_slice %230 {offsets = [1, 0], sizes = [1, 256], strides = [1, 1]} : vector<4x256xf32> to vector<1x256xf32>
    %239 = vector.broadcast %237 : vector<8x1xf32> to vector<8x256xf32>
    %240 = vector.broadcast %238 : vector<1x256xf32> to vector<8x256xf32>
    %241 = arith.mulf %239, %240 : vector<8x256xf32>
    %242 = arith.addf %236, %241 : vector<8x256xf32>
    %243 = vector.extract_strided_slice %4 {offsets = [0, 34], sizes = [8, 1], strides = [1, 1]} : vector<8x36xf32> to vector<8x1xf32>
    %244 = vector.extract_strided_slice %230 {offsets = [2, 0], sizes = [1, 256], strides = [1, 1]} : vector<4x256xf32> to vector<1x256xf32>
    %245 = vector.broadcast %243 : vector<8x1xf32> to vector<8x256xf32>
    %246 = vector.broadcast %244 : vector<1x256xf32> to vector<8x256xf32>
    %247 = arith.mulf %245, %246 : vector<8x256xf32>
    %248 = arith.addf %242, %247 : vector<8x256xf32>
    %249 = vector.extract_strided_slice %4 {offsets = [0, 35], sizes = [8, 1], strides = [1, 1]} : vector<8x36xf32> to vector<8x1xf32>
    %250 = vector.extract_strided_slice %230 {offsets = [3, 0], sizes = [1, 256], strides = [1, 1]} : vector<4x256xf32> to vector<1x256xf32>
    %251 = vector.broadcast %249 : vector<8x1xf32> to vector<8x256xf32>
    %252 = vector.broadcast %250 : vector<1x256xf32> to vector<8x256xf32>
    %253 = arith.mulf %251, %252 : vector<8x256xf32>
    %254 = arith.addf %248, %253 : vector<8x256xf32>
    %c0_11 = arith.constant 0 : index
    %c0_12 = arith.constant 0 : index
    %255 = vector.load %arg4[%c0_11, %c0_12] : memref<8x1xf32, #tpu.memory_space<vmem>>, vector<8x1xf32>
    %256 = vector.broadcast %255 : vector<8x1xf32> to vector<8x256xf32>
    %257 = arith.addf %254, %256 : vector<8x256xf32>
    %cst_13 = arith.constant 0.000000e+00 : f32
    %258 = vector.broadcast %cst_13 : f32 to vector<8x256xf32>
    %259 = arith.cmpf oge, %257, %258 : vector<8x256xf32>
    %c0_14 = arith.constant 0 : index
    %c0_15 = arith.constant 0 : index
    %260 = vector.load %arg5[%c0_14, %c0_15] : memref<8x1xf32, #tpu.memory_space<vmem>>, vector<8x1xf32>
    %261 = vector.broadcast %260 : vector<8x1xf32> to vector<8x256xf32>
    %262 = arith.mulf %261, %257 : vector<8x256xf32>
    %263 = arith.select %259, %257, %262 : vector<8x256xi1>, vector<8x256xf32>
    %c0_16 = arith.constant 0 : index
    %c0_17 = arith.constant 0 : index
    %c0_18 = arith.constant 0 : index
    %264 = vector.load %arg7[%c0_16, %c0_17, %c0_18] : memref<1x8x256xf32, #tpu.memory_space<vmem>>, vector<1x8x256xf32>
    %265 = vector.shape_cast %264 : vector<1x8x256xf32> to vector<8x256xf32>
    %266 = vector.shape_cast %263 : vector<8x256xf32> to vector<1x8x256xf32>
    tpu.vector_store %arg7[%c0_16, %c0_17, %c0_18], %266 {strides = array<i32>} : memref<1x8x256xf32, #tpu.memory_space<vmem>>, vector<1x8x256xf32>,
    return
  }
  func.func @transform_0(%arg0: i32, %arg1: i32) -> (i32, i32, i32, i32) {
    %c0_i32 = arith.constant 0 : i32
    %c0_i32_0 = arith.constant 0 : i32
    %c0_i32_1 = arith.constant 0 : i32
    return %arg0, %arg1, %c0_i32, %c0_i32_0 : i32, i32, i32, i32
  }
  func.func @transform_1(%arg0: i32, %arg1: i32) -> (i32, i32) {
    %c0_i32 = arith.constant 0 : i32
    %c0_i32_0 = arith.constant 0 : i32
    %c0_i32_1 = arith.constant 0 : i32
    return %c0_i32, %c0_i32_0 : i32, i32
  }
  func.func @transform_2(%arg0: i32, %arg1: i32) -> (i32, i32) {
    %c0_i32 = arith.constant 0 : i32
    %c0_i32_0 = arith.constant 0 : i32
    %c0_i32_1 = arith.constant 0 : i32
    return %c0_i32, %c0_i32_0 : i32, i32
  }
  func.func @transform_3(%arg0: i32, %arg1: i32) -> (i32, i32) {
    %c0_i32 = arith.constant 0 : i32
    %c0_i32_0 = arith.constant 0 : i32
    %c0_i32_1 = arith.constant 0 : i32
    return %c0_i32, %c0_i32_0 : i32, i32
  }
  func.func @transform_4(%arg0: i32, %arg1: i32) -> (i32, i32) {
    %c0_i32 = arith.constant 0 : i32
    %c0_i32_0 = arith.constant 0 : i32
    %c0_i32_1 = arith.constant 0 : i32
    return %c0_i32, %c0_i32_0 : i32, i32
  }
  func.func @transform_5(%arg0: i32, %arg1: i32) -> (i32, i32, i32) {
    %c0_i32 = arith.constant 0 : i32
    %c0_i32_0 = arith.constant 0 : i32
    return %arg0, %c0_i32, %arg1 : i32, i32, i32
  }
}

</mosaic_0001>

<bundles_post_ra>
// kernel: tpu_custom_call.1
= control target key start
LH: loop header
LB: loop body
LE: loop exit
PB: predicated region body
PF: predicated region fallthrough
CT: control target
= control target key end

     0   :  { %10 = vsyncpa [#allocation3], 0  ;;  %s2009_s0 = inlined_call_operand.vmem [shape: bf16[2,1,4,288], index: 0, kind: input, shape index: {}]   ;;  %s2010_s1 = inlined_call_operand.vmem [shape: f32[8,36], index: 1, kind: input, shape index: {}]   ;;  %s2011_s2 = inlined_call_operand.vmem [shape: f32[8,1], index: 2, kind: input, shape index: {}]   ;;  %s2012_s3 = inlined_call_operand.vmem [shape: f32[8,1], index: 3, kind: input, shape index: {}]   ;;  %s2013_s4 = inlined_call_operand.vmem [shape: f32[3,256], index: 4, kind: input, shape index: {}]   ;;  %s2014_s5 = inlined_call_operand.hbm [shape: f32[2,8,256], index: 5, kind: output, shape index: {}]  }
   0x1   :  { %12 = vsyncpa [#allocation3 + $0x1], 0  ;;  %s1529_s18 = smov 0   ;;  %s1531_s19 = smov 0  }
   0x2   :  { %s1533_s20 = smov 0   ;;  %s1535_s21 = smov 0  }
   0x3   :  { %s1537_s22 = smov 0   ;;  %s1539_s23 = smov 0  }
   0x4 LB: > { %s1191_s24 = sadd.s32 4294967295, %s1456_s23   ;;  %s1192_s25 = sadd.s32 4294967294, %s1456_s23   ;;  %s1456_s23 = sphi %s1539_s23, %s18_s23   ;;  %s1452_s22 = sphi %s1537_s22, %s2021_s22   ;;  %s1448_s21 = sphi %s1535_s21, %s2020_s21   ;;  %s1444_s20 = sphi %s1533_s20, %s2019_s20   ;;  %s1440_s19 = sphi %s1531_s19, %s2018_s19   ;;  %s1436_s18 = sphi %s1529_s18, %s2017_s18  }
   0x5   : > { %s30_s26 = sadd.s32 1, %s1452_s22  ;;  %s151_s27 = sadd.s32 1, %s1444_s20 }
   0x6   : > { %p32_p0 = scmp.ge.s32.totalorder %s30_s26, 2  ;;  %p161_p1 = scmp.ne.s32.totalorder %s1444_s20, %s1440_s19 }
   0x7   : > { %p162_p2 = scmp.eq.s32.totalorder %s1191_s24, 1  ;;  %p167_p3 = scmp.ne.s32.totalorder %s1440_s19, %s1436_s18 }
   0x8   : > { %s2023_s26 = smov (%p32_p0, %s30_s26), 0  ;;  %p168_p5 = scmp.eq.s32.totalorder %s1192_s25, 1 }
   0x9   : > { %p1569_p4 = por %p162_p2, %p161_p1  ;;  %s146_s29 = ssub.s32 %s1452_s22, %s2023_s26 }
   0xa   : > { %p1195_p6 = scmp.ge.s32.totalorder %s1456_s23, 1  ;;  %p149_p7 = scmp.eq.s32.totalorder %s146_s29, 0 }
   0xb   : > { %p1576_p8 = por %p168_p5, %p167_p3  ;;  %p210_p9 = scmp.lt.s32.totalorder %s1456_s23, 3 }
   0xc   : > { %s1582_s6 = scalar_select %p149_p7, %s1444_s20, %s151_s27  }
   0xd   : > { %p211_p10 = pnand %p1195_p6, %p210_p9 }
   0xe   : > { %v1587_v0 = vld [vmem:[%s2010_s1] sm:$0xff] (!%p211_p10)  ;;  %p242_p11 = scmp.lt.s32.totalorder (!%p211_p10), %s1448_s21, 1  ;;  %v1458_v1 = vmov (!%p211_p10), 1   ;;  %v1459_v2 = vmov (!%p211_p10), 0   ;;  %v1460_v3 = vmov (!%p211_p10), 2   ;;  %v1461_v4 = vmov (!%p211_p10), 4  }
   0xf   : > { %214 = sbr.rel (%p211_p10) target bundleno = 421 (0x1a5), region = 40  ;;  %1301 = vset.pattern.permute.xlu1 (!%p211_p10), %v1458_v1  ;;  %1300 = vset.pattern.permute.xlu0 (!%p211_p10), %v1459_v2  ;;  %v1462_v8 = vmov (!%p211_p10), 3   ;;  %s1463_s14 = smov (!%p211_p10), 1   ;;  %v1464_v10 = vmov (!%p211_p10), 5   ;;  %v1465_v11 = vmov (!%p211_p10), 6   ;;  %v1466_v12 = vmov (!%p211_p10), 7  }
  0x10   : > { %308 = vperm.xlu1 (!%p211_p10), %1301, %v1587_v0   ;;  %292 = vperm.xlu0 (!%p211_p10), %1300, %v1587_v0   ;;  %s1467_s15 = smov (!%p211_p10), 127   ;;  %v1468_v13 = vmov (!%p211_p10), 8   ;;  %v1469_v14 = vmov (!%p211_p10), 9   ;;  %s1470_s16 = smov (!%p211_p10), 112   ;;  %v1471_v15 = vmov (!%p211_p10), 17   ;;  %v1472_v16 = vmov (!%p211_p10), 10  }
  0x11   : > { %v1473_v17 = vmov (!%p211_p10), 11   ;;  %s1474_s17 = smov (!%p211_p10), 96   ;;  %v1475_v19 = vmov (!%p211_p10), 28   ;;  %v1476_v20 = vmov (!%p211_p10), 16   ;;  %v1477_v21 = vmov (!%p211_p10), 31   ;;  %s1203_s11 = sshll.u32 (!%p211_p10), %s1448_s21, 8 }
  0x12   : > { %v1478_v22 = vmov (!%p211_p10), 18   ;;  %v1479_v23 = vmov (!%p211_p10), 14   ;;  %v1480_v24 = vmov (!%p211_p10), 19   ;;  %v1481_v25 = vmov (!%p211_p10), 24   ;;  %v1651_v44 = vld [vmem:[%s2013_s4] sm:$0x77] (!%p211_p10) }
  0x13   : > { %v1482_v26 = vmov (!%p211_p10), 29   ;;  %v1483_v27 = vmov (!%p211_p10), 26   ;;  %v1484_v28 = vmov (!%p211_p10), 30   ;;  %v1485_v29 = vmov (!%p211_p10), 12   ;;  %s1498_s24 = smov (!%p211_p10), [#allocation2]  }
  0x14   : > { %1302 = vset.pattern.permute.xlu1 (!%p211_p10), %v1460_v3  ;;  %1309 = vset.pattern.permute.xlu0 (!%p211_p10), %v1461_v4  ;;  %v1486_v30 = vmov (!%p211_p10), 13   ;;  %v1487_v31 = vmov (!%p211_p10), 15   ;;  %v1488_v32 = vmov (!%p211_p10), 32   ;;  %v1489_v33 = vmov (!%p211_p10), 20   ;;  %s1382_s25 = sshll.u32 (!%p211_p10), %s1498_s24, 4  ;;  %s1383_s25 = int_to_ptr.vmem [resolvable:$false] %s1382_s25 }
  0x15   : > { %324 = vperm.xlu1 (!%p211_p10), %1302, %v1587_v0   ;;  %v1490_v34 = vmov (!%p211_p10), 21   ;;  %v1491_v35 = vmov (!%p211_p10), 22   ;;  %v1492_v36 = vmov (!%p211_p10), 23   ;;  %v1493_v37 = vmov (!%p211_p10), 25   ;;  %s1384_s27 = scalar_lea.vmem (!%p211_p10), %s1383_s25, 512 }
  0x16   : > { %s243_s9 = scalar_select %p242_p11, %s1448_s21, 1  ;;  %v1494_v38 = vmov 27   ;;  %v264_v39 = vlaneseq  ;;  %v1495_v40 = vmov 34   ;;  %vm557_vm2 = vcmask 916480  }
  0x17   : > { %vm836_vm3 = vcmask 785408  }
  0x18   : > { %s1204_s10 = smul.u32 6, %s243_s9  ;;  %v1642_v41 = vshrl.u32 %v264_v39, 7  ;;  %v1653_v45 = vand.u32 127, %v264_v39  ;;  %s239_s9 = sand.u32 1, %s1440_s19  }
  0x19   : > { %1303 = vset.pattern.permute.xlu1 %v1462_v8  ;;  %s1096_s21 = scalar_lea.sflag [#allocation3], %s239_s9 }
  0x1a   : > { %s250_s13 = scalar_lea.vmem %s2009_s0, %s1204_s10  ;;  %340 = vperm.xlu1 %1303, %v1587_v0   ;;  %v1645_v42 = vsub.s32 0, %v1642_v41  ;;  %v276_v43 = vsub.s32 4, %v1642_v41  ;;  %v391_v50 = vsub.s32 5, %v1642_v41  ;;  %v1660_v51 = vsub.s32 1, %v1642_v41  ;;  %s1196_s10 = sshll.u32 %s239_s9, 4 }
  0x1b   : > { %v253_v5 = vld [vmem:[%s250_s13] sm:$0x3f]  ;;  %vm266_vm0 = vcmp.lt.s32.totalorder %v1653_v45, 1  ;;  %v417_v62 = vsub.s32 6, %v1642_v41  ;;  %v1677_v63 = vsub.s32 2, %v1642_v41  ;;  %v1684_v4 = vsub.s32 3, %v1642_v41 }
  0x1c   : > { %v1598_v6 = vunpack.c.l.bf16 %v253_v5  ;;  %v1616_v18 = vunpack.c.h.bf16 %v253_v5  ;;  %v273_v48 = vrot.slane %v1651_v44, %v1645_v42  ;;  %v277_v49 = vrot.slane %v1651_v44, %v276_v43  ;;  %s241_s12 = scalar_lea.vmem [#allocation2], %s1196_s10 }
  0x1d   : > { %vm463_vm1 = vcmp.lt.s32.totalorder %v1653_v45, 127  ;;  %s1112_s13 = sshll.u32 %s241_s12, 4  ;;  %s1962_s13 = int_to_ptr.vmem [resolvable:$true] %s1112_s13 }
  0x1e   : > { %v258_v7 = vcombine.high %v1598_v6, %v1598_v6  ;;  %1310 = vset.pattern.permute.xlu1 %v1464_v10  ;;  %v388_v52 = vrot.slane %v1598_v6, %v1660_v51  ;;  %v1666_v53 = vrot.slane %v273_v48, %v1645_v42  ;;  %v1669_v54 = vrot.slane %v277_v49, %v1645_v42  ;;  %p1385_p1 = scmp.lt.s32.totalorder %s1962_s13, %s1383_s25 }
  0x1f   : > { %382 = vperm.xlu1 %1310, %v1587_v0   ;;  %v392_v56 = vrot.slane %v1598_v6, %v391_v50  ;;  %v362_v57 = vrot.slane %v1598_v6, %v1645_v42  ;;  %v366_v61 = vrot.slane %v1598_v6, %v276_v43 }
  0x20   : > { %v1304_v9 = vpack.i.bf16 %v258_v7, %v1598_v6  ;;  %v1687_v5 = vrot.slane %v388_v52, %v1660_v51 }
  0x21   : > { %v1695_v10 = vrot.slane %v362_v57, %v1645_v42 }
  0x22   : > { %1305 = vrot.lane.b32.xlu0 %v1304_v9, %s1463_s14 }
  0x23   : > { %1311 = vset.pattern.permute.xlu1 %v1465_v11  ;;  %v1698_v11 = vrot.slane %v366_v61, %v1645_v42 }
  0x24   : > { %408 = vperm.xlu1 %1311, %v1587_v0  }
  0x26   : > { %356 = vperm.xlu0 %1309, %v1587_v0  }
  0x28   : > { %1314 = vrot.lane.b32.xlu1 %v1304_v9, %s1467_s15 }
  0x29   : > { %1318 = vset.pattern.permute.xlu1 %v1468_v13  ;;  %v418_v13 = vrot.slane %v1598_v6, %v417_v62 }
  0x2a   : > { %1312 = vset.pattern.permute.xlu0 %v1466_v12  ;;  %v414_v12 = vrot.slane %v1598_v6, %v1677_v63 }
  0x2b   : > { %434 = vperm.xlu0 %1312, %v1587_v0   ;;  %v1723_v49 = vrot.slane %v418_v13, %v1677_v63 }
  0x2c   : > { %487 = vperm.xlu1 %1318, %v1587_v0   ;;  %v1720_v48 = vrot.slane %v414_v12, %v1677_v63 }
  0x2f   : > { %1319 = vset.pattern.permute.xlu0 %v1469_v14  ;;  %v443_v14 = vsub.s32 7, %v1642_v41 }
  0x30   : > { %503 = vperm.xlu0 %1319, %v1587_v0   ;;  %1320 = vset.pattern.permute.xlu1 %v1472_v16 }
  0x31   : > { %519 = vperm.xlu1 %1320, %v1587_v0  }
  0x34   : > { %1323 = vrot.lane.b32.xlu0 %v1304_v9, %s1470_s16 }
  0x35   : > { %1328 = vset.pattern.permute.xlu0 %v1471_v15  ;;  %1321 = vset.pattern.permute.xlu1 %v1473_v17 }
  0x36   : > { %535 = vperm.xlu1 %1321, %v1587_v0  }
  0x38   : > { %666 = vperm.xlu0 %1328, %v1587_v0  }
  0x3a   : > { %555 = vrot.lane.b32.xlu1 %v1616_v18, %s1470_s16 }
  0x3b   : > { %1327 = vset.pattern.permute.xlu1 %v1476_v20 }
  0x3c   : > { %1332 = vrot.lane.b32.xlu0 %v1304_v9, %s1474_s17  ;;  %v1692_v9 = vrot.slane %v392_v56, %v1660_v51 }
  0x3d   : > { %1336 = vset.pattern.permute.xlu0 %v1475_v19 }
  0x3e   : > { %635 = vperm.xlu1 %1327, %v1587_v0  }
  0x40   : > { %914 = vperm.xlu0 %1336, %v1587_v0  }
  0x42   : > { %1329 = vset.pattern.permute.xlu1 %v1478_v22 }
  0x43   : > { %697 = vperm.xlu1 %1329, %v1587_v0  }
  0x44   : > { %1339 = vset.pattern.permute.xlu0 %v1477_v21 }
  0x45   : > { %980 = vperm.xlu0 %1339, %v1587_v0  }
  0x47   : > { %1330 = vset.pattern.permute.xlu1 %v1480_v24 }
  0x48   : > { %728 = vperm.xlu1 %1330, %v1587_v0  }
  0x49   : > { %1342 = vset.pattern.permute.xlu0 %v1479_v23 }
  0x4a   : > { %603 = vperm.xlu0 %1342, %v1587_v0  }
  0x4c   : > { %834 = vrot.lane.b32.xlu1 %v1616_v18, %s1474_s17 }
  0x4d   : > { %1337 = vset.pattern.permute.xlu1 %v1482_v26 }
  0x4e   : > { %1348 = vset.pattern.permute.xlu0 %v1481_v25 }
  0x4f   : > { %850 = vperm.xlu0 %1348, %v1587_v0  }
  0x50   : > { %936 = vperm.xlu1 %1337, %v1587_v0  }
  0x53   : > { %1350 = vset.pattern.permute.xlu0 %v1483_v27 }
  0x54   : > { %882 = vperm.xlu0 %1350, %v1587_v0   ;;  %1338 = vset.pattern.permute.xlu1 %v1484_v28 }
  0x55   : > { %958 = vperm.xlu1 %1338, %v1587_v0  }
  0x58   : > { %1367 = vset.pattern.permute.xlu0 %v1488_v32 }
  0x59   : > { %1340 = vset.pattern.permute.xlu1 %v1485_v29 }
  0x5a   : > { %571 = vperm.xlu1 %1340, %v1587_v0  }
  0x5e   : > { %1341 = vset.pattern.permute.xlu1 %v1486_v30 }
  0x5f   : > { %587 = vperm.xlu1 %1341, %v1587_v0  }
  0x63   : > { %1343 = vset.pattern.permute.xlu1 %v1487_v31 }
  0x64   : > { %619 = vperm.xlu1 %1343, %v1587_v0  }
  0x68   : > { %1344 = vset.pattern.permute.xlu1 %v1489_v33 }
  0x69   : > { %767 = vperm.xlu1 %1344, %v1587_v0  }
  0x6d   : > { %1345 = vset.pattern.permute.xlu1 %v1490_v34 }
  0x6e   : > { %783 = vperm.xlu1 %1345, %v1587_v0  }
  0x72   : > { %1346 = vset.pattern.permute.xlu1 %v1491_v35  ;;  %v440_v35 = vrot.slane %v1598_v6, %v1684_v4 }
  0x73   : > { %799 = vperm.xlu1 %1346, %v1587_v0  }
  0x74   : > { %v1726_v52 = vrot.slane %v440_v35, %v1684_v4 }
  0x77   : > { %1347 = vset.pattern.permute.xlu1 %v1492_v36  ;;  %v444_v36 = vrot.slane %v1598_v6, %v443_v14 }
  0x78   : > { %815 = vperm.xlu1 %1347, %v1587_v0  }
  0x7c   : > { %1349 = vset.pattern.permute.xlu1 %v1493_v37 }
  0x7d   : > { %866 = vperm.xlu1 %1349, %v1587_v0  }
  0x81   : > { %1351 = vset.pattern.permute.xlu1 %v1494_v38 }
  0x82   : > { %898 = vperm.xlu1 %1351, %v1587_v0  }
  0x86   : > { %1374 = vset.pattern.permute.xlu1 %v1495_v40 }
  0x8f   : > { %v309_v46 = vpop.permute.xlu1 %308  ;;  %v293_v47 = vpop.permute.xlu0 %292 }
  0x94   : > { %v1306_v55 = vpop.permute.xlu0 %1305  ;;  %v325_v60 = vpop.permute.xlu1 %324 }
  0x95   : > { %v1308_v58 = vunpack.i.h.bf16 %v1306_v55  ;;  %v1307_v59 = vunpack.i.l.bf16 %v1306_v55  ;;  %v1729_v55 = vrot.slane %v444_v36, %v1684_v4 }
  0x97   : > { %v267_v1 = vsel %vm266_vm0, %v1307_v59, %v1308_v58  ;;  %v268_v3 = vsel %vm266_vm0, %v1308_v58, %v1307_v59  ;;  %v473_v59 = vrot.slane %v1651_v44, %v417_v62 }
  0x98   : > { %v288_v7 = vmul.f32 %v1666_v53, %v268_v3  ;;  %v289_v8 = vmul.f32 %v1669_v54, %v267_v1 }
  0x99   : > { %v341_v20 = vpop.permute.xlu1 %340 }
  0x9a   : > { %v298_v15 = vrot.slane %v288_v7, %v1645_v42  ;;  %v302_v16 = vrot.slane %v289_v8, %v1645_v42  ;;  %v314_v17 = vrot.slane %v288_v7, %v1660_v51  ;;  %v318_v19 = vrot.slane %v289_v8, %v1660_v51 }
  0x9b   : > { %v330_v21 = vrot.slane %v288_v7, %v1677_v63  ;;  %v334_v22 = vrot.slane %v289_v8, %v1677_v63  ;;  %v346_v23 = vrot.slane %v288_v7, %v1684_v4  ;;  %v350_v24 = vrot.slane %v289_v8, %v1684_v4 }
  0x9c   : > { %v303_v25 = vmul.f32 %v298_v15, %v293_v47  ;;  %v304_v26 = vmul.f32 %v302_v16, %v293_v47  ;;  %v319_v27 = vmul.f32 %v314_v17, %v309_v46  ;;  %v320_v28 = vmul.f32 %v318_v19, %v309_v46 }
  0x9d   : > { %v335_v29 = vmul.f32 %v330_v21, %v325_v60  ;;  %v336_v30 = vmul.f32 %v334_v22, %v325_v60  ;;  %v351_v31 = vmul.f32 %v346_v23, %v341_v20  ;;  %v352_v32 = vmul.f32 %v350_v24, %v341_v20 }
  0x9e   : > { %v321_v33 = vadd.f32 %v319_v27, %v303_v25  ;;  %v322_v34 = vadd.f32 %v320_v28, %v304_v26  ;;  %v383_v37 = vpop.permute.xlu1 %382  ;;  %v469_v60 = vrot.slane %v1651_v44, %v1677_v63  ;;  %v1743_v44 = vrot.slane %v473_v59, %v1677_v63 }
  0x9f   : > { %v403_v40 = vmul.f32 %v1687_v5, %v383_v37  ;;  %v404_v41 = vmul.f32 %v1692_v9, %v383_v37 }
  0xa0   : > { %v337_v38 = vadd.f32 %v335_v29, %v321_v33  ;;  %v338_v39 = vadd.f32 %v336_v30, %v322_v34  ;;  %v1740_v62 = vrot.slane %v469_v60, %v1677_v63 }
  0xa2   : > { %v353_v50 = vadd.f32 %v351_v31, %v337_v38  ;;  %v354_v6 = vadd.f32 %v352_v32, %v338_v39 }
  0xa3   : > { %v409_v58 = vpop.permute.xlu1 %408 }
  0xa4   : > { %v429_v61 = vmul.f32 %v1720_v48, %v409_v58  ;;  %v430_v1 = vmul.f32 %v1723_v49, %v409_v58 }
  0xa5   : > { %v357_v43 = vpop.permute.xlu0 %356 }
  0xa6   : > { %v377_v46 = vmul.f32 %v1695_v10, %v357_v43  ;;  %v378_v47 = vmul.f32 %v1698_v11, %v357_v43 }
  0xa7   : > { %v1315_v16 = vpop.permute.xlu1 %1314 }
  0xa8   : > { %v379_v56 = vadd.f32 %v377_v46, %v353_v50  ;;  %v380_v57 = vadd.f32 %v378_v47, %v354_v6  ;;  %v1317_v17 = vunpack.i.h.bf16 %v1315_v16  ;;  %v1316_v19 = vunpack.i.l.bf16 %v1315_v16 }
  0xaa   : > { %v435_v3 = vpop.permute.xlu0 %434  ;;  %v405_v7 = vadd.f32 %v403_v40, %v379_v56  ;;  %v406_v8 = vadd.f32 %v404_v41, %v380_v57  ;;  %v464_v22 = vsel %vm463_vm1, %v1316_v19, %v1317_v17  ;;  %v465_v23 = vsel %vm463_vm1, %v1317_v17, %v1316_v19 }
  0xab   : > { %v455_v12 = vmul.f32 %v1726_v52, %v435_v3  ;;  %v456_v13 = vmul.f32 %v1729_v55, %v435_v3  ;;  %v484_v24 = vmul.f32 %v1740_v62, %v464_v22  ;;  %v485_v25 = vmul.f32 %v1743_v44, %v465_v23  ;;  %v488_v26 = vpop.permute.xlu1 %487 }
  0xac   : > { %v431_v14 = vadd.f32 %v429_v61, %v405_v7  ;;  %v432_v15 = vadd.f32 %v430_v1, %v406_v8 }
  0xad   : > { %v493_v28 = vrot.slane %v484_v24, %v1645_v42  ;;  %v497_v29 = vrot.slane %v485_v25, %v1645_v42  ;;  %v509_v30 = vrot.slane %v484_v24, %v1660_v51  ;;  %v513_v31 = vrot.slane %v485_v25, %v1660_v51 }
  0xae   : > { %v457_v20 = vadd.f32 %v455_v12, %v431_v14  ;;  %v458_v21 = vadd.f32 %v456_v13, %v432_v15  ;;  %v525_v32 = vrot.slane %v484_v24, %v1677_v63  ;;  %v529_v33 = vrot.slane %v485_v25, %v1677_v63 }
  0xaf   : > { %v504_v27 = vpop.permute.xlu0 %503  ;;  %v498_v34 = vmul.f32 %v493_v28, %v488_v26  ;;  %v499_v35 = vmul.f32 %v497_v29, %v488_v26  ;;  %v541_v6 = vrot.slane %v484_v24, %v1684_v4  ;;  %v545_v56 = vrot.slane %v485_v25, %v1684_v4 }
  0xb0   : > { %v514_v36 = vmul.f32 %v509_v30, %v504_v27  ;;  %v515_v37 = vmul.f32 %v513_v31, %v504_v27  ;;  %v520_v38 = vpop.permute.xlu1 %519  ;;  %v703_v29 = vrot.slane %v1616_v18, %v1677_v63 }
  0xb1   : > { %v500_v39 = vadd.f32 %v498_v34, %v457_v20  ;;  %v501_v40 = vadd.f32 %v499_v35, %v458_v21  ;;  %v530_v41 = vmul.f32 %v525_v32, %v520_v38  ;;  %v531_v43 = vmul.f32 %v529_v33, %v520_v38 }
  0xb2   : > { %v672_v21 = vrot.slane %v1616_v18, %v1660_v51  ;;  %v641_v33 = vrot.slane %v1616_v18, %v1645_v42  ;;  %v708_v35 = vrot.slane %v703_v29, %v1677_v63 }
  0xb3   : > { %v516_v46 = vadd.f32 %v514_v36, %v500_v39  ;;  %v517_v47 = vadd.f32 %v515_v37, %v501_v40  ;;  %v1324_v50 = vpop.permute.xlu0 %1323  ;;  %v734_v40 = vrot.slane %v1616_v18, %v1684_v4 }
  0xb4   : > { %v1326_v60 = vunpack.i.h.bf16 %v1324_v50  ;;  %v1325_v61 = vunpack.i.l.bf16 %v1324_v50  ;;  %v677_v26 = vrot.slane %v672_v21, %v1660_v51  ;;  %v646_v37 = vrot.slane %v641_v33, %v1645_v42 }
  0xb5   : > { %v532_v57 = vadd.f32 %v530_v41, %v516_v46  ;;  %v533_v58 = vadd.f32 %v531_v43, %v517_v47  ;;  %v536_v59 = vpop.permute.xlu1 %535  ;;  %v739_v43 = vrot.slane %v734_v40, %v1684_v4 }
  0xb6   : > { %v546_v1 = vmul.f32 %v541_v6, %v536_v59  ;;  %v547_v3 = vmul.f32 %v545_v56, %v536_v59  ;;  %v558_v13 = vsel %vm557_vm2, %v1325_v61, %v1326_v60 }
  0xb7   : > { %v667_v17 = vpop.permute.xlu0 %666 }
  0xb8   : > { %v1759_v7 = vadd.f32 %v546_v1, %v532_v57  ;;  %v1761_v8 = vadd.f32 %v547_v3, %v533_v58  ;;  %v678_v23 = vmul.f32 %v667_v17, %v1687_v5  ;;  %v680_v30 = vmul.f32 %v677_v26, %v667_v17 }
  0xb9   : > { %v556_v12 = vpop.permute.xlu1 %555  ;;  %v679_v47 = vmul.f32 %v667_v17, %v1692_v9 }
  0xba   : > { %v559_v14 = vsel %vm557_vm2, %v1326_v60, %v556_v12 }
  0xbb   : > { %v1352_v15 = vpack.i.bf16 %v559_v14, %v558_v13  ;;  %v1333_v22 = vpop.permute.xlu0 %1332 }
  0xbc   : > { %v1335_v24 = vunpack.i.h.bf16 %v1333_v22  ;;  %v1334_v25 = vunpack.i.l.bf16 %v1333_v22 }
  0xbd   : > { %v636_v16 = vpop.permute.xlu1 %635  ;;  %1353 = vrot.lane.b32.xlu0 %v1352_v15, %s1463_s14 }
  0xbe   : > { %v648_v20 = vmul.f32 %v636_v16, %v1698_v11  ;;  %v837_v28 = vsel %vm836_vm3, %v1334_v25, %v1335_v24  ;;  %v647_v38 = vmul.f32 %v636_v16, %v1695_v10  ;;  %v649_v41 = vmul.f32 %v646_v37, %v636_v16 }
  0xbf   : > { %v915_v50 = vpop.permute.xlu0 %914 }
  0xc0   : > { %v918_v56 = vmul.f32 %v915_v50, %v1698_v11  ;;  %v917_v59 = vmul.f32 %v915_v50, %v1695_v10  ;;  %v919_v61 = vmul.f32 %v915_v50, %v646_v37  ;;  %v1496_v11 = vmov 33  }
  0xc1   : > { %1358 = vrot.lane.b32.xlu0 %v1352_v15, %s1467_s15 }
  0xc2   : > { %v698_v19 = vpop.permute.xlu1 %697 }
  0xc3   : > { %v709_v36 = vmul.f32 %v698_v19, %v1720_v48  ;;  %v711_v39 = vmul.f32 %v708_v35, %v698_v19  ;;  %v710_v18 = vmul.f32 %v698_v19, %v1723_v49  ;;  %v1083_v19 = vld [vmem:[%s2012_s3] sm:$0xff] }
  0xc4   : > { %v981_v12 = vpop.permute.xlu0 %980 }
  0xc5   : > { %655 = vrot.lane.b32.xlu0 %v648_v20, %s1470_s16  ;;  %v983_v14 = vmul.f32 %v981_v12, %v1726_v52  ;;  %v985_v15 = vmul.f32 %v981_v12, %v739_v43  ;;  %v984_v16 = vmul.f32 %v981_v12, %v1729_v55 }
  0xc7   : > { %v729_v27 = vpop.permute.xlu1 %728 }
  0xc8   : > { %v740_v46 = vmul.f32 %v729_v27, %v1726_v52  ;;  %v742_v6 = vmul.f32 %v739_v43, %v729_v27  ;;  %v741_v57 = vmul.f32 %v729_v27, %v1729_v55 }
  0xc9   : > { %684 = vrot.lane.b32.xlu0 %v678_v23, %s1470_s16  ;;  %v604_v21 = vpop.permute.xlu0 %603 }
  0xcb   : > { %v835_v31 = vpop.permute.xlu1 %834 }
  0xcc   : > { %v838_v32 = vsel %vm836_vm3, %v1335_v24, %v835_v31 }
  0xcd   : > { %v1362_v34 = vpack.i.bf16 %v838_v32, %v837_v28  ;;  %688 = vrot.lane.b32.xlu0 %v680_v30, %s1470_s16 }
  0xce   : > { %v1837_v22 = vpop.permute.xlu0 %850 }
  0xcf   : > { %1363 = vrot.lane.b32.xlu1 %v1362_v34, %s1463_s14  ;;  %v937_v58 = vpop.permute.xlu1 %936 }
  0xd0   : > { %v941_v60 = vmul.f32 %v937_v58, %v677_v26  ;;  %v939_v3 = vmul.f32 %v937_v58, %v1687_v5  ;;  %v940_v13 = vmul.f32 %v937_v58, %v1692_v9  ;;  %v1073_v9 = vld [vmem:[%s2011_s2] sm:$0xff] }
  0xd1   : > { %715 = vrot.lane.b32.xlu0 %v709_v36, %s1470_s16 }
  0xd3   : > { %653 = vrot.lane.b32.xlu1 %v647_v38, %s1470_s16  ;;  %v1841_v24 = vpop.permute.xlu0 %882 }
  0xd4   : > { %v959_v1 = vpop.permute.xlu1 %958 }
  0xd5   : > { %719 = vrot.lane.b32.xlu0 %v711_v39, %s1470_s16  ;;  %v963_v10 = vmul.f32 %v959_v1, %v708_v35  ;;  %v961_v5 = vmul.f32 %v959_v1, %v1720_v48  ;;  %v962_v52 = vmul.f32 %v959_v1, %v1723_v49  ;;  %v1497_v48 = vmov 35  }
  0xd7   : > { %657 = vrot.lane.b32.xlu1 %v649_v41, %s1470_s16 }
  0xd9   : > { %746 = vrot.lane.b32.xlu0 %v740_v46, %s1470_s16  ;;  %v572_v17 = vpop.permute.xlu1 %571 }
  0xdb   : > { %686 = vrot.lane.b32.xlu1 %v679_v47, %s1470_s16 }
  0xdd   : > { %750 = vrot.lane.b32.xlu0 %v742_v6, %s1470_s16 }
  0xde   : > { %v588_v49 = vpop.permute.xlu1 %587 }
  0xdf   : > { %717 = vrot.lane.b32.xlu1 %v710_v18, %s1470_s16 }
  0xe1   : > { %925 = vrot.lane.b32.xlu0 %v918_v56, %s1474_s17 }
  0xe3   : > { %748 = vrot.lane.b32.xlu1 %v741_v57, %s1470_s16  ;;  %v620_v20 = vpop.permute.xlu1 %619  ;;  %s1960_s16 = scalar_lea.hbm %s2014_s5, %s1203_s11 }
  0xe5   : > { %1010 = vperm.xlu0 %1367, %v1587_v0  }
  0xe7   : > { %923 = vrot.lane.b32.xlu1 %v917_v59, %s1474_s17 }
  0xe8   : > { %v1835_v55 = vpop.permute.xlu1 %767 }
  0xe9   : > { %949 = vrot.lane.b32.xlu0 %v941_v60, %s1474_s17 }
  0xea   : > { %1373 = vset.pattern.permute.xlu0 %v1496_v11 }
  0xeb   : > { %927 = vrot.lane.b32.xlu1 %v919_v61, %s1474_s17 }
  0xed   : > { %1026 = vperm.xlu0 %1373, %v1587_v0   ;;  %v1839_v23 = vpop.permute.xlu1 %783 }
  0xef   : > { %945 = vrot.lane.b32.xlu1 %v939_v3, %s1474_s17 }
  0xf1   : > { %971 = vrot.lane.b32.xlu0 %v963_v10, %s1474_s17 }
  0xf2   : > { %1376 = vset.pattern.permute.xlu0 %v1459_v2 }
  0xf3   : > { %947 = vrot.lane.b32.xlu1 %v940_v13, %s1474_s17 }
  0xf5   : > { %989 = vrot.lane.b32.xlu0 %v983_v14, %s1474_s17 }
  0xf7   : > { %1369 = vrot.lane.b32.xlu1 %v1362_v34, %s1467_s15 }
  0xf9   : > { %993 = vrot.lane.b32.xlu0 %v985_v15, %s1474_s17 }
  0xfb   : > { %967 = vrot.lane.b32.xlu1 %v961_v5, %s1474_s17 }
  0xfd   : > { %1076 = vperm.xlu0 %1376, %v1073_v9  }
  0xff   : > { %969 = vrot.lane.b32.xlu1 %v962_v52, %s1474_s17 }
 0x103   : > { %1042 = vperm.xlu1 %1374, %v1587_v0  }
 0x107   : > { %991 = vrot.lane.b32.xlu1 %v984_v16, %s1474_s17  ;;  %s1378_s17 = scalar_lea.vmem %s1962_s13, 256 }
 0x108   : > { %1375 = vset.pattern.permute.xlu1 %v1497_v48  ;;  %p1379_p12 = scmp.ne.s32.totalorder %s1962_s13, %s1378_s17  ;;  %p1386_p2 = scmp.lt.s32.totalorder %s1384_s27, %s1378_s17 }
 0x10a   : > { %p1380_p13 = pnand %p1379_p12, %p1569_p4  ;;  %p1387_p3 = por %p1386_p2, %p1385_p1 }
 0x10b   : > { %1058 = vperm.xlu1 %1375, %v1587_v0   ;;  %v1843_v0 = vpop.permute.xlu1 %799 }
 0x10c   : > { %p1381_p0 = pneg %p1380_p13 }
 0x10e   : > { %p1388_p5 = pnand %p1387_p3, %p1381_p0 }
 0x10f   : > { %1377 = vset.pattern.permute.xlu1 %v1459_v2  ;;  %v1845_v26 = vpop.permute.xlu1 %815 }
 0x110   : > { %1086 = vperm.xlu1 %1377, %v1083_v19  }
 0x113   : > { %v1853_v35 = vpop.permute.xlu1 %866 }
 0x117   : > { %v1870_v11 = vpop.permute.xlu1 %898 }
 0x12f   : > { %v1354_v25 = vpop.permute.xlu0 %1353 }
 0x130   : > { %v1356_v27 = vunpack.i.h.bf16 %v1354_v25  ;;  %v1355_v28 = vunpack.i.l.bf16 %v1354_v25 }
 0x132   : > { %v566_v2 = vsel %vm266_vm0, %v1355_v28, %v1356_v27  ;;  %v567_v29 = vsel %vm266_vm0, %v1356_v27, %v1355_v28 }
 0x133   : > { %v568_v30 = vmul.f32 %v567_v29, %v1666_v53  ;;  %v569_v31 = vmul.f32 %v566_v2, %v1669_v54  ;;  %v1359_v32 = vpop.permute.xlu0 %1358 }
 0x134   : > { %v1361_v33 = vunpack.i.h.bf16 %v1359_v32  ;;  %v1360_v34 = vunpack.i.l.bf16 %v1359_v32 }
 0x135   : > { %v577_v36 = vrot.slane %v568_v30, %v1645_v42  ;;  %v593_v37 = vrot.slane %v568_v30, %v1660_v51  ;;  %v581_v39 = vrot.slane %v569_v31, %v1645_v42  ;;  %v597_v40 = vrot.slane %v569_v31, %v1660_v51 }
 0x136   : > { %v763_v38 = vsel %vm463_vm1, %v1361_v33, %v1360_v34  ;;  %v609_v47 = vrot.slane %v568_v30, %v1677_v63  ;;  %v625_v56 = vrot.slane %v568_v30, %v1684_v4  ;;  %v613_v57 = vrot.slane %v569_v31, %v1677_v63 }
 0x137   : > { %v1862_v41 = vmul.f32 %v763_v38, %v1743_v44  ;;  %v656_v43 = vpop.permute.xlu0 %655  ;;  %v582_v46 = vmul.f32 %v577_v36, %v572_v17  ;;  %v583_v50 = vmul.f32 %v581_v39, %v572_v17  ;;  %v598_v18 = vmul.f32 %v593_v37, %v588_v49 }
 0x138   : > { %v599_v59 = vmul.f32 %v597_v40, %v588_v49  ;;  %v629_v60 = vrot.slane %v569_v31, %v1684_v4  ;;  %v614_v3 = vmul.f32 %v609_v47, %v604_v21  ;;  %v615_v12 = vmul.f32 %v613_v57, %v604_v21 }
 0x139   : > { %v584_v6 = vadd.f32 %v582_v46, %v1759_v7  ;;  %v585_v58 = vadd.f32 %v583_v50, %v1761_v8  ;;  %v630_v14 = vmul.f32 %v625_v56, %v620_v20  ;;  %v762_v21 = vsel %vm463_vm1, %v1360_v34, %v1361_v33 }
 0x13a   : > { %v631_v15 = vmul.f32 %v629_v60, %v620_v20  ;;  %v764_v20 = vmul.f32 %v762_v21, %v1740_v62  ;;  %v777_v47 = vrot.slane %v1862_v41, %v1645_v42 }
 0x13b   : > { %v685_v61 = vpop.permute.xlu0 %684  ;;  %v600_v1 = vadd.f32 %v598_v18, %v584_v6  ;;  %v601_v10 = vadd.f32 %v599_v59, %v585_v58  ;;  %v793_v59 = vrot.slane %v1862_v41, %v1660_v51 }
 0x13c   : > { %v789_v58 = vrot.slane %v764_v20, %v1660_v51 }
 0x13d   : > { %v616_v13 = vadd.f32 %v614_v3, %v600_v1  ;;  %v617_v7 = vadd.f32 %v615_v12, %v601_v10  ;;  %v805_v1 = vrot.slane %v764_v20, %v1677_v63  ;;  %v809_v3 = vrot.slane %v1862_v41, %v1677_v63 }
 0x13f   : > { %v689_v5 = vpop.permute.xlu0 %688  ;;  %v632_v9 = vadd.f32 %v630_v14, %v616_v13  ;;  %v633_v52 = vadd.f32 %v631_v15, %v617_v7  ;;  %v779_v14 = vmul.f32 %v777_v47, %v1835_v55  ;;  %v821_v7 = vrot.slane %v764_v20, %v1684_v4 }
 0x140   : > { %v825_v15 = vrot.slane %v1862_v41, %v1684_v4 }
 0x141   : > { %v1364_v16 = vpop.permute.xlu1 %1363  ;;  %v826_v41 = vmul.f32 %v821_v7, %v1845_v26 }
 0x142   : > { %v1366_v48 = vunpack.i.h.bf16 %v1364_v16  ;;  %v1365_v8 = vunpack.i.l.bf16 %v1364_v16  ;;  %v795_v16 = vmul.f32 %v793_v59, %v1839_v23 }
 0x143   : > { %v716_v17 = vpop.permute.xlu0 %715 }
 0x144   : > { %v845_v19 = vsel %vm266_vm0, %v1365_v8, %v1366_v48 }
 0x145   : > { %v1875_v49 = vmul.f32 %v845_v19, %v1669_v54  ;;  %v654_v25 = vpop.permute.xlu1 %653  ;;  %v773_v54 = vrot.slane %v764_v20, %v1645_v42 }
 0x146   : > { %v659_v29 = vsel %vm557_vm2, %v654_v25, %v656_v43 }
 0x147   : > { %v720_v27 = vpop.permute.xlu0 %719  ;;  %v663_v37 = vadd.f32 %v659_v29, %v632_v9  ;;  %v778_v50 = vmul.f32 %v773_v54, %v1835_v55  ;;  %v860_v25 = vrot.slane %v1875_v49, %v1645_v42  ;;  %v892_v29 = vrot.slane %v1875_v49, %v1677_v63 }
 0x149   : > { %v658_v28 = vpop.permute.xlu1 %657 }
 0x14a   : > { %v660_v30 = vsel %vm557_vm2, %v656_v43, %v658_v28  ;;  %v846_v43 = vsel %vm266_vm0, %v1366_v48, %v1365_v8  ;;  %v810_v8 = vmul.f32 %v805_v1, %v1843_v0 }
 0x14b   : > { %v747_v31 = vpop.permute.xlu0 %746  ;;  %v664_v38 = vadd.f32 %v660_v30, %v633_v52  ;;  %v847_v10 = vmul.f32 %v846_v43, %v1666_v53  ;;  %v794_v52 = vmul.f32 %v789_v58, %v1839_v23  ;;  %v811_v53 = vmul.f32 %v809_v3, %v1843_v0 }
 0x14c   : > { %v894_v43 = vmul.f32 %v892_v29, %v1841_v24 }
 0x14d   : > { %v687_v2 = vpop.permute.xlu1 %686  ;;  %v856_v55 = vrot.slane %v847_v10, %v1645_v42  ;;  %v872_v21 = vrot.slane %v847_v10, %v1660_v51  ;;  %v888_v0 = vrot.slane %v847_v10, %v1677_v63 }
 0x14e   : > { %v690_v32 = vsel %vm557_vm2, %v685_v61, %v687_v2  ;;  %v691_v36 = vsel %vm557_vm2, %v687_v2, %v689_v5  ;;  %v876_v2 = vrot.slane %v1875_v49, %v1660_v51 }
 0x14f   : > { %v694_v40 = vadd.f32 %v690_v32, %v663_v37  ;;  %v695_v46 = vadd.f32 %v691_v36, %v664_v38  ;;  %v751_v6 = vpop.permute.xlu0 %750  ;;  %v861_v32 = vmul.f32 %v856_v55, %v1837_v22  ;;  %v862_v36 = vmul.f32 %v860_v25, %v1837_v22 }
 0x150   : > { %v877_v54 = vmul.f32 %v872_v21, %v1853_v35 }
 0x151   : > { %v718_v39 = vpop.permute.xlu1 %717 }
 0x152   : > { %v721_v33 = vsel %vm557_vm2, %v716_v17, %v718_v39  ;;  %v722_v34 = vsel %vm557_vm2, %v718_v39, %v720_v27  ;;  %v827_v27 = vmul.f32 %v825_v15, %v1845_v26  ;;  %v904_v26 = vrot.slane %v847_v10, %v1684_v4 }
 0x153   : > { %v725_v18 = vadd.f32 %v721_v33, %v694_v40  ;;  %v726_v56 = vadd.f32 %v722_v34, %v695_v46  ;;  %v878_v39 = vmul.f32 %v876_v2, %v1853_v35  ;;  %v908_v33 = vrot.slane %v1875_v49, %v1684_v4 }
 0x154   : > { %v893_v40 = vmul.f32 %v888_v0, %v1841_v24  ;;  %v909_v22 = vmul.f32 %v904_v26, %v1870_v11 }
 0x155   : > { %v749_v57 = vpop.permute.xlu1 %748 }
 0x156   : > { %v752_v60 = vsel %vm557_vm2, %v747_v31, %v749_v57  ;;  %v753_v61 = vsel %vm557_vm2, %v749_v57, %v751_v6  ;;  %v926_v57 = vpop.permute.xlu0 %925 }
 0x157   : > { %v756_v12 = vadd.f32 %v752_v60, %v725_v18  ;;  %v757_v13 = vadd.f32 %v753_v61, %v726_v56  ;;  %v910_v18 = vmul.f32 %v908_v33, %v1870_v11 }
 0x159   : > { %v780_v5 = vadd.f32 %v778_v50, %v756_v12  ;;  %v781_v9 = vadd.f32 %v779_v14, %v757_v13  ;;  %v924_v48 = vpop.permute.xlu1 %923 }
 0x15a   : > { %v929_v7 = vsel %vm836_vm3, %v924_v48, %v926_v57 }
 0x15b   : > { %v796_v17 = vadd.f32 %v794_v52, %v780_v5  ;;  %v797_v19 = vadd.f32 %v795_v16, %v781_v9 }
 0x15d   : > { %v812_v28 = vadd.f32 %v810_v8, %v796_v17  ;;  %v813_v23 = vadd.f32 %v811_v53, %v797_v19  ;;  %v928_v20 = vpop.permute.xlu1 %927 }
 0x15e   : > { %v930_v15 = vsel %vm836_vm3, %v926_v57, %v928_v20 }
 0x15f   : > { %v828_v30 = vadd.f32 %v826_v41, %v812_v28  ;;  %v829_v31 = vadd.f32 %v827_v27, %v813_v23 }
 0x161   : > { %v863_v37 = vadd.f32 %v861_v32, %v828_v30  ;;  %v864_v38 = vadd.f32 %v862_v36, %v829_v31  ;;  %v946_v34 = vpop.permute.xlu1 %945 }
 0x163   : > { %v879_v46 = vadd.f32 %v877_v54, %v863_v37  ;;  %v880_v47 = vadd.f32 %v878_v39, %v864_v38 }
 0x164   : > { %v1011_v60 = vpop.permute.xlu0 %1010 }
 0x165   : > { %v895_v50 = vadd.f32 %v893_v40, %v879_v46  ;;  %v896_v6 = vadd.f32 %v894_v43, %v880_v47  ;;  %v948_v56 = vpop.permute.xlu1 %947 }
 0x166   : > { %v951_v53 = vsel %vm836_vm3, %v946_v34, %v948_v56 }
 0x167   : > { %v911_v58 = vadd.f32 %v909_v22, %v895_v50  ;;  %v912_v35 = vadd.f32 %v910_v18, %v896_v6 }
 0x168   : > { %v950_v24 = vpop.permute.xlu0 %949 }
 0x169   : > { %v1370_v59 = vpop.permute.xlu1 %1369  ;;  %v933_v5 = vadd.f32 %v929_v7, %v911_v58  ;;  %v934_v9 = vadd.f32 %v930_v15, %v912_v35  ;;  %v952_v8 = vsel %vm836_vm3, %v948_v56, %v950_v24 }
 0x16a   : > { %v1372_v49 = vunpack.i.h.bf16 %v1370_v59  ;;  %v1371_v61 = vunpack.i.l.bf16 %v1370_v59 }
 0x16b   : > { %v955_v19 = vadd.f32 %v951_v53, %v933_v5  ;;  %v956_v55 = vadd.f32 %v952_v8, %v934_v9 }
 0x16c   : > { %v1006_v1 = vsel %vm463_vm1, %v1372_v49, %v1371_v61  ;;  %v1027_v10 = vpop.permute.xlu0 %1026  ;;  %v1005_v11 = vsel %vm463_vm1, %v1371_v61, %v1372_v49 }
 0x16d   : > { %v1008_v3 = vmul.f32 %v1006_v1, %v1743_v44  ;;  %v968_v12 = vpop.permute.xlu1 %967  ;;  %v1007_v52 = vmul.f32 %v1005_v11, %v1740_v62 }
 0x16f   : > { %v1016_v48 = vrot.slane %v1007_v52, %v1645_v42  ;;  %v1020_v25 = vrot.slane %v1008_v3, %v1645_v42  ;;  %v1032_v41 = vrot.slane %v1007_v52, %v1660_v51  ;;  %v1036_v62 = vrot.slane %v1008_v3, %v1660_v51 }
 0x170   : > { %v972_v13 = vpop.permute.xlu0 %971  ;;  %v1048_v32 = vrot.slane %v1007_v52, %v1677_v63  ;;  %v1052_v42 = vrot.slane %v1008_v3, %v1677_v63  ;;  %v1064_v38 = vrot.slane %v1007_v52, %v1684_v4  ;;  %v1068_v39 = vrot.slane %v1008_v3, %v1684_v4 }
 0x171   : > { %v970_v14 = vpop.permute.xlu1 %969  ;;  %v1021_v30 = vmul.f32 %v1016_v48, %v1011_v60  ;;  %v1022_v31 = vmul.f32 %v1020_v25, %v1011_v60  ;;  %v1037_v36 = vmul.f32 %v1032_v41, %v1027_v10  ;;  %v1038_v51 = vmul.f32 %v1036_v62, %v1027_v10 }
 0x172   : > { %v973_v17 = vsel %vm836_vm3, %v968_v12, %v970_v14  ;;  %v974_v45 = vsel %vm836_vm3, %v970_v14, %v972_v13 }
 0x173   : > { %v977_v21 = vadd.f32 %v973_v17, %v955_v19  ;;  %v978_v27 = vadd.f32 %v974_v45, %v956_v55 }
 0x174   : > { %v990_v16 = vpop.permute.xlu0 %989 }
 0x178   : > { %v994_v28 = vpop.permute.xlu0 %993 }
 0x17c   : > { %v1077_v50 = vpop.permute.xlu0 %1076 }
 0x182   : > { %v1043_v44 = vpop.permute.xlu1 %1042 }
 0x183   : > { %v1053_v33 = vmul.f32 %v1048_v32, %v1043_v44  ;;  %v1054_v34 = vmul.f32 %v1052_v42, %v1043_v44 }
 0x186   : > { %v992_v23 = vpop.permute.xlu1 %991 }
 0x187   : > { %v995_v20 = vsel %vm836_vm3, %v990_v16, %v992_v23  ;;  %v996_v2 = vsel %vm836_vm3, %v992_v23, %v994_v28 }
 0x188   : > { %v999_v0 = vadd.f32 %v995_v20, %v977_v21  ;;  %v1000_v29 = vadd.f32 %v996_v2, %v978_v27 }
 0x18a   : > { %v1023_v54 = vadd.f32 %v1021_v30, %v999_v0  ;;  %v1024_v26 = vadd.f32 %v1022_v31, %v1000_v29  ;;  %v1059_v37 = vpop.permute.xlu1 %1058 }
 0x18b   : > { %v1069_v47 = vmul.f32 %v1064_v38, %v1059_v37  ;;  %v1070_v43 = vmul.f32 %v1068_v39, %v1059_v37 }
 0x18c   : > { %v1039_v40 = vadd.f32 %v1037_v36, %v1023_v54  ;;  %v1040_v46 = vadd.f32 %v1038_v51, %v1024_v26 }
 0x18e   : > { %v1055_v63 = vadd.f32 %v1053_v33, %v1039_v40  ;;  %v1056_v22 = vadd.f32 %v1054_v34, %v1040_v46 }
 0x18f   : > { %v1087_v56 = vpop.permute.xlu1 %1086 }
 0x190   : > { %v1071_v6 = vadd.f32 %v1069_v47, %v1055_v63  ;;  %v1072_v18 = vadd.f32 %v1070_v43, %v1056_v22 }
 0x192   : > { %v1079_v57 = vadd.f32 %v1077_v50, %v1071_v6  ;;  %v1080_v58 = vadd.f32 %v1077_v50, %v1072_v18 }
 0x194   : > { %vm1081_vm4 = vcmp.ge.f32.partialorder %v1079_v57, 0.0  ;;  %vm1082_vm5 = vcmp.ge.f32.partialorder %v1080_v58, 0.0  ;;  %v1089_v4 = vmul.f32 %v1087_v56, %v1079_v57  ;;  %v1090_v35 = vmul.f32 %v1087_v56, %v1080_v58 }
 0x196   : > { %v1091_v59 = vsel %vm1081_vm4, %v1079_v57, %v1089_v4  ;;  %v1092_v60 = vsel %vm1082_vm5, %v1080_v58, %v1090_v35 }
 0x197   : > { %1093 = vst [vmem:[%s241_s12] sm:$0xff] %v1091_v59  ;;  %1094 = vst [vmem:[%s241_s12 + $0x8] sm:$0xff] %v1092_v60 }
 0x198   : > { %1391 = shalt.err (!%p1388_p5)
}
 0x199   : > { %s1392_s29 = scalar_lea.hbm %s1960_s16, 256  ;;  %s1396_s9 = scalar_lea.hbm %s2014_s5, 512 }
 0x19a   : > { %p1393_p6 = scmp.ne.s32.totalorder %s1960_s16, %s1392_s29  ;;  %p1397_p10 = scmp.lt.u32.totalorder %s1960_s16, %s2014_s5 }
 0x19b   : > { %p1398_p11 = scmp.lt.u32.totalorder %s1396_s9, %s1392_s29  ;;  %p1400_p13 = scmp.lt.u32.totalorder %s1392_s29, %s1960_s16 }
 0x19c   : > { %p1394_p7 = pnand %p1393_p6, %p1569_p4 }
 0x19d   : > { %p1399_p12 = por %p1398_p11, %p1397_p10 }
 0x19e   : > { %p1395_p9 = pneg %p1394_p7 }
 0x19f   : > { %p1401_p0 = por %p1400_p13, %p1399_p12 }
 0x1a1   : > { %p1402_p1 = pnand %p1401_p0, %p1395_p9 }
 0x1a3   : > { %1405 = shalt.err (!%p1402_p1)
}
 0x1a4   : > { %1205 = dma.vmem_to_hbm [thread:$0]  (%p1569_p4), %s1962_s13, 256, %s1960_s16, %s1096_s21  }
 0x1a5 PF: > { %p1211_p2 = scmp.ge.s32.totalorder %s1456_s23, 2  ;;  %s1124_s12 = sand.u32 1, %s1436_s18  }
 0x1a6   : > { %s1125_s14 = scalar_lea.sflag [#allocation3], %s1124_s12 }
 0x1a7   : > { %p1208_p3 = pnand %p1211_p2, %p1576_p8 }
 0x1a9   : > { %1431 = dma.done.wait (!%p1208_p3), %s1125_s14, 256  }
 0x1aa   : > { %1433 = vsyncadd (!%p1208_p3), %s1125_s14, 4294967040  ;;  %s18_s23 = sadd.s32 1, %s1456_s23   ;;  %s2017_s18 = smov %s1440_s19 }
 0x1ab   : > { %p15_p5 = scmp.ge.s32.totalorder %s18_s23, 4   ;;  %s2018_s19 = smov %s1444_s20 }
 0x1ac   : > { %s2019_s20 = smov %s1582_s6  ;;  %s2020_s21 = smov %s1452_s22 }
 0x1ad   : > { %s2021_s22 = smov %s2023_s26  ;;  %17 = sbr.rel (!%p15_p5) target bundleno = 4 (0x4), region = 75 }
 0x1b4   :  { %1130 = vsyncpa [#allocation3], 1 }
 0x1b5   :  { %1132 = vsyncpa [#allocation3 + $0x1], 1 }

</bundles_post_ra>
